<compile_context>
chip_gen: v6e
topology: v6e:2x2x1
jax: 0.10.0
libtpu: 0.0.40
codegen_flags: <defaults>
</compile_context>

<pallas_src>
import math
from typing import List, Optional

import jax
import jax.numpy as jnp
from jax.experimental import pallas as pl
from jax.experimental.pallas import tpu as pltpu
from jax.scipy.linalg import block_diag

EPS = 1e-5  # torch.nn.LayerNorm default


def _ln_full(h, gamma, beta):
    """Reference LayerNorm over the full last axis (biased var, eps in rsqrt)."""
    mu = jnp.mean(h, axis=-1, keepdims=True)
    c = h - mu
    var = jnp.mean(c * c, axis=-1, keepdims=True)
    return c * jax.lax.rsqrt(var + EPS) * gamma + beta


def _make_kernel(has_branches: bool, n_cat: int, matmul_dtype):
    """Builds the kernel body.

    VMEM ref order:
      if has_branches: x_fold, W1_fold, b1, g1, beta1, Mavg, W2_fold, b2   (8)
      n_cat times:     cat_i                                               (n_cat)
      aggregate:       gA, betaA, Magg, W3_fold, b3, gB, betaB             (7)
      out_ref
    All row-indexed tensors arrive pre-folded (F rows packed along lanes) and
    all weights are F-block-diagonal, so every op below is lane-dense.
    """

    def mm(a, b):
        # b (weights / averaging matrices) is already in matmul_dtype.
        return jnp.dot(a.astype(matmul_dtype), b,
                       preferred_element_type=jnp.float32)

    def block_ln(x, avg, gamma, beta):
        # Per-block LayerNorm: `avg` is block-diagonal (blocks of out_ch lanes)
        # with entries 1/out_ch, so one MXU pass yields the per-group mean
        # already broadcast to every lane of its group — no XLU lane reduces.
        mu = mm(x, avg)
        c = x - mu
        var = mm(c * c, avg)              # exact E[(x-mu)^2], f32 accumulation
        return c * jax.lax.rsqrt(var + EPS) * gamma + beta

    def kernel(*refs):
        idx = 0
        acc = None
        if has_branches:
            (x_ref, w1_ref, b1_ref, g1_ref, be1_ref,
             mavg_ref, w2_ref, b2_ref) = refs[:8]
            idx = 8
            # Fused first layer: one MXU pass over the (branch x fold)-block-
            # diagonal W1.
            h = mm(x_ref[...], w1_ref[...]) + b1_ref[...]
            h = block_ln(h, mavg_ref[...], g1_ref[...], be1_ref[...])
            h = jnp.maximum(h, 0.0)
            # Row-stacked (and fold-block-diagonal) second layer: the sum over
            # branches falls out of the matmul for free.
            acc = mm(h, w2_ref[...]) + b2_ref[...]
        # Categorical inputs: summed in-kernel (no wrapper pre-sum pass).
        for _ in range(n_cat):
            c = refs[idx][...]
            idx += 1
            acc = c if acc is None else acc + c
        (ga_ref, ba_ref, magg_ref, w3_ref, b3_ref,
         gb_ref, bb_ref, out_ref) = refs[idx:idx + 8]
        h = block_ln(acc, magg_ref[...], ga_ref[...], ba_ref[...])
        h = jnp.maximum(h, 0.0)
        h = mm(h, w3_ref[...]) + b3_ref[...]
        h = block_ln(h, magg_ref[...], gb_ref[...], bb_ref[...])
        out_ref[...] = h.astype(out_ref.dtype)   # lane-dense store

    return kernel


def multiple_input_embedding(
    continuous_inputs: Optional[List[jax.Array]],
    params: dict,
    categorical_inputs: Optional[List[jax.Array]] = None,
    *,
    tile_m: int = 2048,
    matmul_dtype=jnp.bfloat16,
) -> jax.Array:
    """Pallas TPU implementation of TorchMultipleInputEmbedding.forward."""
    conts = list(continuous_inputs) if continuous_inputs is not None else []
    cats = list(categorical_inputs) if categorical_inputs is not None else []
    n_cont, n_cat = len(conts), len(cats)
    has_branches = n_cont > 0
    if not has_branches and n_cat == 0:
        raise ValueError("need at least one continuous or categorical input")

    out_ch = params["W3"].shape[1]
    n_rows = (conts[0] if has_branches else cats[0]).shape[0]

    # Row-fold factor: pack F consecutive rows onto the lane axis so every
    # kernel tensor is lane-dense (out_ch=32 -> F=4 -> 128 lanes).  gcd picks
    # the largest power-of-two fold compatible with n_rows; F=1 degenerates to
    # the plain (masked-lane) layout with identical code.
    if out_ch <= 128 and 128 % out_ch == 0:
        fold = math.gcd(128 // out_ch, n_rows)
    else:
        fold = 1
    w = fold * out_ch                 # folded output width
    rows_f = n_rows // fold           # folded row count

    # Folded row tile: large (pipelined, mem/VPU-bound kernel).  Keep >=2 grid
    # steps for moderate N so the "parallel" row axis can occupy both
    # TensorCores on v7x; on 1-TC chips the extra step is ~0.35us of overhead.
    tile_f = min(max(1, tile_m // fold), rows_f)
    if n_rows >= 1024:
        tile_f = min(tile_f, pl.cdiv(rows_f, 2))
    if tile_f < rows_f:
        tile_f = min(max(8, (tile_f // 8) * 8), rows_f)   # sublane alignment
    grid = (pl.cdiv(rows_f, tile_f),)

    def row_spec(c):
        return pl.BlockSpec((tile_f, c), lambda i: (i, 0))

    def const_spec(shape):
        # Same block every grid step -> stays VMEM-resident, no re-DMA.
        return pl.BlockSpec(shape, lambda i: (0, 0))

    def fold_rows(x):
        # [n_rows, c] -> [rows_f, fold*c]; contiguous row-major, so free.
        return x.reshape(rows_f, fold * x.shape[1])

    def tile_vec(v):
        return jnp.tile(v.reshape(1, -1).astype(jnp.float32), (1, fold))

    def blk_avg(width):
        # Block-diagonal averaging matrix (out_ch-lane blocks, entries 1/out_ch).
        blk = jnp.ones((out_ch, out_ch), jnp.float32) / out_ch
        return block_diag(*([blk] * (width // out_ch))).astype(matmul_dtype)

    args, in_specs = [], []

    if has_branches:
        branches = params["branches"]
        k_total = sum(b["W1"].shape[0] for b in branches)
        hdim = n_cont * out_ch
        fh = fold * hdim

        # One lane-dense, row-folded activation stream; cast to the matmul
        # dtype here so the concat pass through HBM is half-width for bf16.
        x_fold = fold_rows(
            jnp.concatenate([x.astype(matmul_dtype) for x in conts], axis=-1))

        # (branch x fold)-block-diagonal first layer -> a single MXU pass.
        w1_bd = block_diag(*[b["W1"] for b in branches])
        w1_fold = block_diag(*([w1_bd] * fold)).astype(matmul_dtype)
        b1 = tile_vec(jnp.concatenate([b["b1"] for b in branches]))
        g1 = tile_vec(jnp.concatenate([b["g1"] for b in branches]))
        be1 = tile_vec(jnp.concatenate([b["beta1"] for b in branches]))

        # Per-branch LN stats via a block-averaging matmul (no lane reshuffles).
        mavg = blk_avg(fh)
        # TODO(synk): for many branches (fold*hdim >> 256) factor this as
        # [fh, fold*n_cont] @ [fold*n_cont, fh] to keep MXU work / VMEM
        # residency linear in hdim instead of quadratic.

        # Row-stacked W2 (branch sum for free), then fold-block-diagonal.
        w2_stack = jnp.concatenate([b["W2"] for b in branches], axis=0)
        w2_fold = block_diag(*([w2_stack] * fold)).astype(matmul_dtype)
        b2 = tile_vec(jnp.stack([b["b2"] for b in branches]).sum(axis=0))

        args += [x_fold, w1_fold, b1, g1, be1, mavg, w2_fold, b2]
        in_specs += [
            row_spec(fold * k_total),
            const_spec((fold * k_total, fh)),
            const_spec((1, fh)),
            const_spec((1, fh)),
            const_spec((1, fh)),
            const_spec((fh, fh)),
            const_spec((fh, w)),
            const_spec((1, w)),
        ]

    # Categorical inputs: streamed individually (no wrapper pre-sum), row-folded
    # so their loads are lane-dense f32; summed inside the kernel.
    for c in cats:
        args.append(fold_rows(c.astype(jnp.float32)))
        in_specs.append(row_spec(w))

    magg = blk_avg(w)
    w3_fold = block_diag(*([params["W3"]] * fold)).astype(matmul_dtype)
    args += [tile_vec(params["gA"]), tile_vec(params["betaA"]), magg, w3_fold,
             tile_vec(params["b3"]), tile_vec(params["gB"]),
             tile_vec(params["betaB"])]
    in_specs += [const_spec((1, w)), const_spec((1, w)), const_spec((w, w)),
                 const_spec((w, w)), const_spec((1, w)), const_spec((1, w)),
                 const_spec((1, w))]

    kernel = _make_kernel(has_branches, n_cat, matmul_dtype)
    out_fold = pl.pallas_call(
        kernel,
        out_shape=jax.ShapeDtypeStruct((rows_f, w), jnp.float32),
        grid=grid,
        in_specs=in_specs,
        out_specs=row_spec(w),
        compiler_params=pltpu.CompilerParams(
            dimension_semantics=("parallel",),
        ),
    )(*args)
    # Un-fold the rows: free row-major reshape back to [n_rows, out_ch].
    return out_fold.reshape(n_rows, out_ch)


def _reference(continuous_inputs, params, categorical_inputs=None):
    outs = []
    for x, p in zip(continuous_inputs, params["branches"]):
        h = x @ p["W1"] + p["b1"]
        h = _ln_full(h, p["g1"], p["beta1"])
        h = jnp.maximum(h, 0.0)
        h = h @ p["W2"] + p["b2"]
        outs.append(h)
    out = jnp.sum(jnp.stack(outs), axis=0)
    if categorical_inputs is not None:
        out = out + jnp.sum(jnp.stack(categorical_inputs), axis=0)
    out = _ln_full(out, params["gA"], params["betaA"])
    out = jnp.maximum(out, 0.0)
    out = out @ params["W3"] + params["b3"]
    out = _ln_full(out, params["gB"], params["betaB"])
    return out


def _init_params(key, in_channels, out_channel):
    params = {"branches": []}
    for in_ch in in_channels:
        key, k1, k2 = jax.random.split(key, 3)
        params["branches"].append(
            dict(
                W1=jax.random.normal(k1, (in_ch, out_channel), jnp.float32) * 0.1,
                b1=jnp.zeros((out_channel,), jnp.float32) + 0.01,
                g1=jnp.ones((out_channel,), jnp.float32),
                beta1=jnp.zeros((out_channel,), jnp.float32),
                W2=jax.random.normal(k2, (out_channel, out_channel), jnp.float32) * 0.1,
                b2=jnp.zeros((out_channel,), jnp.float32) - 0.01,
            )
        )
    key, k3 = jax.random.split(key)
    params.update(
        gA=jnp.ones((out_channel,), jnp.float32),
        betaA=jnp.zeros((out_channel,), jnp.float32),
        W3=jax.random.normal(k3, (out_channel, out_channel), jnp.float32) * 0.1,
        b3=jnp.zeros((out_channel,), jnp.float32),
        gB=jnp.ones((out_channel,), jnp.float32) * 1.5,
        betaB=jnp.zeros((out_channel,), jnp.float32) + 0.1,
    )
    return params


if __name__ == "__main__":
    key = jax.random.PRNGKey(0)
    in_channels = [8, 16]   # two continuous input streams
    out_channel = 32
    n_rows = 16

    key, kp, kx0, kx1, kc0, kc1 = jax.random.split(key, 6)
    params = _init_params(kp, in_channels, out_channel)

    continuous_inputs = [
        jax.random.normal(kx0, (n_rows, in_channels[0]), jnp.float32),
        jax.random.normal(kx1, (n_rows, in_channels[1]), jnp.float32),
    ]
    categorical_inputs = [
        jax.random.normal(kc0, (n_rows, out_channel), jnp.float32),
        jax.random.normal(kc1, (n_rows, out_channel), jnp.float32),
    ]
    ref = _reference(continuous_inputs, params, categorical_inputs)

    # 1) f32 matmul path (tight tolerance), folded lane-dense layout (F=4).
    out = jax.block_until_ready(
        multiple_input_embedding(continuous_inputs, params, categorical_inputs,
                                 matmul_dtype=jnp.float32))
    assert out.shape == (n_rows, out_channel)
    assert jnp.allclose(out, ref, atol=2e-4, rtol=2e-4), "mismatch vs reference (f32)"

    # 2) no categorical inputs
    out_nc = jax.block_until_ready(
        multiple_input_embedding(continuous_inputs, params, None,
                                 matmul_dtype=jnp.float32))
    ref_nc = _reference(continuous_inputs, params, None)
    assert jnp.allclose(out_nc, ref_nc, atol=2e-4, rtol=2e-4), "mismatch (no cats)"

    # 3) multi-step row grid with a ragged last tile (pipelining + masked tail).
    n_big = 200
    key, kb0, kb1, kbc = jax.random.split(key, 4)
    big_cont = [
        jax.random.normal(kb0, (n_big, in_channels[0]), jnp.float32),
        jax.random.normal(kb1, (n_big, in_channels[1]), jnp.float32),
    ]
    big_cat = [jax.random.normal(kbc, (n_big, out_channel), jnp.float32)]
    out_big = jax.block_until_ready(
        multiple_input_embedding(big_cont, params, big_cat, tile_m=64,
                                 matmul_dtype=jnp.float32))
    ref_big = _reference(big_cont, params, big_cat)
    assert jnp.allclose(out_big, ref_big, atol=2e-4, rtol=2e-4), "mismatch (tiled grid)"

    # 4) row counts not divisible by the full fold factor (reduced / no fold).
    for n_odd in (14, 13):
        key, ka, kb, kc = jax.random.split(key, 4)
        cont = [jax.random.normal(ka, (n_odd, in_channels[0]), jnp.float32),
                jax.random.normal(kb, (n_odd, in_channels[1]), jnp.float32)]
        cat = [jax.random.normal(kc, (n_odd, out_channel), jnp.float32)]
        out_o = jax.block_until_ready(
            multiple_input_embedding(cont, params, cat, matmul_dtype=jnp.float32))
        ref_o = _reference(cont, params, cat)
        assert jnp.allclose(out_o, ref_o, atol=2e-4, rtol=2e-4), f"mismatch (n={n_odd})"

    # 5) default path: bf16 matmul + LN-stat operands (native MXU), f32 accum.
    out_bf = jax.block_until_ready(
        multiple_input_embedding(continuous_inputs, params, categorical_inputs))
    assert jnp.allclose(out_bf, ref, atol=2e-1, rtol=2e-1), "mismatch (bf16 matmuls)"

    print("KERNEL_OK")
</pallas_src>

<mosaic_0001>
module attributes {stable_mosaic.version = 11 : i64} {
  func.func @kernel(%arg0: i32, %arg1: memref<4x96xf32, #tpu.memory_space<vmem>>, %arg2: memref<96x256xf32, #tpu.memory_space<vmem>>, %arg3: memref<1x256xf32, #tpu.memory_space<vmem>>, %arg4: memref<1x256xf32, #tpu.memory_space<vmem>>, %arg5: memref<1x256xf32, #tpu.memory_space<vmem>>, %arg6: memref<256x256xf32, #tpu.memory_space<vmem>>, %arg7: memref<256x128xf32, #tpu.memory_space<vmem>>, %arg8: memref<1x128xf32, #tpu.memory_space<vmem>>, %arg9: memref<4x128xf32, #tpu.memory_space<vmem>>, %arg10: memref<4x128xf32, #tpu.memory_space<vmem>>, %arg11: memref<1x128xf32, #tpu.memory_space<vmem>>, %arg12: memref<1x128xf32, #tpu.memory_space<vmem>>, %arg13: memref<128x128xf32, #tpu.memory_space<vmem>>, %arg14: memref<128x128xf32, #tpu.memory_space<vmem>>, %arg15: memref<1x128xf32, #tpu.memory_space<vmem>>, %arg16: memref<1x128xf32, #tpu.memory_space<vmem>>, %arg17: memref<1x128xf32, #tpu.memory_space<vmem>>, %arg18: memref<4x128xf32, #tpu.memory_space<vmem>>) attributes {dimension_semantics = [#tpu.dimension_semantics<parallel>], iteration_bounds = array<i64: 1>, scalar_prefetch = 0 : i64, scratch_operands = 0 : i64, tpu.core_type = #tpu.core_type<tc>, window_params = [{transform_indices = @transform_0, window_bounds = array<i64: 4, 96>}, {pipeline_mode = #tpu.pipeline_mode<synchronous>, transform_indices = @transform_1, window_bounds = array<i64: 96, 256>}, {pipeline_mode = #tpu.pipeline_mode<synchronous>, transform_indices = @transform_2, window_bounds = array<i64: 1, 256>}, {pipeline_mode = #tpu.pipeline_mode<synchronous>, transform_indices = @transform_3, window_bounds = array<i64: 1, 256>}, {pipeline_mode = #tpu.pipeline_mode<synchronous>, transform_indices = @transform_4, window_bounds = array<i64: 1, 256>}, {pipeline_mode = #tpu.pipeline_mode<synchronous>, transform_indices = @transform_5, window_bounds = array<i64: 256, 256>}, {pipeline_mode = #tpu.pipeline_mode<synchronous>, transform_indices = @transform_6, window_bounds = array<i64: 256, 128>}, {pipeline_mode = #tpu.pipeline_mode<synchronous>, transform_indices = @transform_7, window_bounds = array<i64: 1, 128>}, {transform_indices = @transform_8, window_bounds = array<i64: 4, 128>}, {transform_indices = @transform_9, window_bounds = array<i64: 4, 128>}, {pipeline_mode = #tpu.pipeline_mode<synchronous>, transform_indices = @transform_10, window_bounds = array<i64: 1, 128>}, {pipeline_mode = #tpu.pipeline_mode<synchronous>, transform_indices = @transform_11, window_bounds = array<i64: 1, 128>}, {pipeline_mode = #tpu.pipeline_mode<synchronous>, transform_indices = @transform_12, window_bounds = array<i64: 128, 128>}, {pipeline_mode = #tpu.pipeline_mode<synchronous>, transform_indices = @transform_13, window_bounds = array<i64: 128, 128>}, {pipeline_mode = #tpu.pipeline_mode<synchronous>, transform_indices = @transform_14, window_bounds = array<i64: 1, 128>}, {pipeline_mode = #tpu.pipeline_mode<synchronous>, transform_indices = @transform_15, window_bounds = array<i64: 1, 128>}, {pipeline_mode = #tpu.pipeline_mode<synchronous>, transform_indices = @transform_16, window_bounds = array<i64: 1, 128>}, {transform_indices = @transform_17, window_bounds = array<i64: 4, 128>}]} {
    %c0 = arith.constant 0 : index
    %c0_0 = arith.constant 0 : index
    %0 = vector.load %arg1[%c0, %c0_0] : memref<4x96xf32, #tpu.memory_space<vmem>>, vector<4x96xf32>
    %c0_1 = arith.constant 0 : index
    %c0_2 = arith.constant 0 : index
    %1 = vector.load %arg2[%c0_1, %c0_2] : memref<96x256xf32, #tpu.memory_space<vmem>>, vector<96x256xf32>
    %cst = arith.constant dense<0.000000e+00> : vector<4x256xf32>
    %2 = tpu.matmul %0, %1, %cst {dimension_numbers = #tpu.dot_dimension_numbers<[1], [0], [0], [1], [0, 0, 1, 1], [], []>} : vector<4x96xf32>, vector<96x256xf32>, vector<4x256xf32> -> vector<4x256xf32>
    %c0_3 = arith.constant 0 : index
    %c0_4 = arith.constant 0 : index
    %3 = vector.load %arg3[%c0_3, %c0_4] : memref<1x256xf32, #tpu.memory_space<vmem>>, vector<1x256xf32>
    %4 = vector.broadcast %3 : vector<1x256xf32> to vector<4x256xf32>
    %5 = arith.addf %2, %4 : vector<4x256xf32>
    %c0_5 = arith.constant 0 : index
    %c0_6 = arith.constant 0 : index
    %6 = vector.load %arg6[%c0_5, %c0_6] : memref<256x256xf32, #tpu.memory_space<vmem>>, vector<256x256xf32>
    %c0_7 = arith.constant 0 : index
    %c0_8 = arith.constant 0 : index
    %7 = vector.load %arg4[%c0_7, %c0_8] : memref<1x256xf32, #tpu.memory_space<vmem>>, vector<1x256xf32>
    %c0_9 = arith.constant 0 : index
    %c0_10 = arith.constant 0 : index
    %8 = vector.load %arg5[%c0_9, %c0_10] : memref<1x256xf32, #tpu.memory_space<vmem>>, vector<1x256xf32>
    %cst_11 = arith.constant dense<0.000000e+00> : vector<4x256xf32>
    %9 = tpu.matmul %5, %6, %cst_11 {dimension_numbers = #tpu.dot_dimension_numbers<[1], [0], [0], [1], [0, 0, 1, 1], [], []>} : vector<4x256xf32>, vector<256x256xf32>, vector<4x256xf32> -> vector<4x256xf32>
    %10 = arith.subf %5, %9 : vector<4x256xf32>
    %11 = arith.mulf %10, %10 : vector<4x256xf32>
    %cst_12 = arith.constant dense<0.000000e+00> : vector<4x256xf32>
    %12 = tpu.matmul %11, %6, %cst_12 {dimension_numbers = #tpu.dot_dimension_numbers<[1], [0], [0], [1], [0, 0, 1, 1], [], []>} : vector<4x256xf32>, vector<256x256xf32>, vector<4x256xf32> -> vector<4x256xf32>
    %cst_13 = arith.constant 9.99999974E-6 : f32
    %13 = vector.broadcast %cst_13 : f32 to vector<4x256xf32>
    %14 = arith.addf %12, %13 : vector<4x256xf32>
    %15 = math.rsqrt %14 : vector<4x256xf32>
    %16 = arith.mulf %10, %15 : vector<4x256xf32>
    %17 = vector.broadcast %7 : vector<1x256xf32> to vector<4x256xf32>
    %18 = arith.mulf %16, %17 : vector<4x256xf32>
    %19 = vector.broadcast %8 : vector<1x256xf32> to vector<4x256xf32>
    %20 = arith.addf %18, %19 : vector<4x256xf32>
    %cst_14 = arith.constant 0.000000e+00 : f32
    %21 = vector.broadcast %cst_14 : f32 to vector<4x256xf32>
    %22 = arith.maximumf %20, %21 : vector<4x256xf32>
    %c0_15 = arith.constant 0 : index
    %c0_16 = arith.constant 0 : index
    %23 = vector.load %arg7[%c0_15, %c0_16] : memref<256x128xf32, #tpu.memory_space<vmem>>, vector<256x128xf32>
    %cst_17 = arith.constant dense<0.000000e+00> : vector<4x128xf32>
    %24 = tpu.matmul %22, %23, %cst_17 {dimension_numbers = #tpu.dot_dimension_numbers<[1], [0], [0], [1], [0, 0, 1, 1], [], []>} : vector<4x256xf32>, vector<256x128xf32>, vector<4x128xf32> -> vector<4x128xf32>
    %c0_18 = arith.constant 0 : index
    %c0_19 = arith.constant 0 : index
    %25 = vector.load %arg8[%c0_18, %c0_19] : memref<1x128xf32, #tpu.memory_space<vmem>>, vector<1x128xf32>
    %26 = vector.broadcast %25 : vector<1x128xf32> to vector<4x128xf32>
    %27 = arith.addf %24, %26 : vector<4x128xf32>
    %c0_20 = arith.constant 0 : index
    %c0_21 = arith.constant 0 : index
    %28 = vector.load %arg9[%c0_20, %c0_21] : memref<4x128xf32, #tpu.memory_space<vmem>>, vector<4x128xf32>
    %29 = arith.addf %27, %28 : vector<4x128xf32>
    %c0_22 = arith.constant 0 : index
    %c0_23 = arith.constant 0 : index
    %30 = vector.load %arg10[%c0_22, %c0_23] : memref<4x128xf32, #tpu.memory_space<vmem>>, vector<4x128xf32>
    %31 = arith.addf %29, %30 : vector<4x128xf32>
    %c0_24 = arith.constant 0 : index
    %c0_25 = arith.constant 0 : index
    %32 = vector.load %arg13[%c0_24, %c0_25] : memref<128x128xf32, #tpu.memory_space<vmem>>, vector<128x128xf32>
    %c0_26 = arith.constant 0 : index
    %c0_27 = arith.constant 0 : index
    %33 = vector.load %arg11[%c0_26, %c0_27] : memref<1x128xf32, #tpu.memory_space<vmem>>, vector<1x128xf32>
    %c0_28 = arith.constant 0 : index
    %c0_29 = arith.constant 0 : index
    %34 = vector.load %arg12[%c0_28, %c0_29] : memref<1x128xf32, #tpu.memory_space<vmem>>, vector<1x128xf32>
    %cst_30 = arith.constant dense<0.000000e+00> : vector<4x128xf32>
    %35 = tpu.matmul %31, %32, %cst_30 {dimension_numbers = #tpu.dot_dimension_numbers<[1], [0], [0], [1], [0, 0, 1, 1], [], []>} : vector<4x128xf32>, vector<128x128xf32>, vector<4x128xf32> -> vector<4x128xf32>
    %36 = arith.subf %31, %35 : vector<4x128xf32>
    %37 = arith.mulf %36, %36 : vector<4x128xf32>
    %cst_31 = arith.constant dense<0.000000e+00> : vector<4x128xf32>
    %38 = tpu.matmul %37, %32, %cst_31 {dimension_numbers = #tpu.dot_dimension_numbers<[1], [0], [0], [1], [0, 0, 1, 1], [], []>} : vector<4x128xf32>, vector<128x128xf32>, vector<4x128xf32> -> vector<4x128xf32>
    %cst_32 = arith.constant 9.99999974E-6 : f32
    %39 = vector.broadcast %cst_32 : f32 to vector<4x128xf32>
    %40 = arith.addf %38, %39 : vector<4x128xf32>
    %41 = math.rsqrt %40 : vector<4x128xf32>
    %42 = arith.mulf %36, %41 : vector<4x128xf32>
    %43 = vector.broadcast %33 : vector<1x128xf32> to vector<4x128xf32>
    %44 = arith.mulf %42, %43 : vector<4x128xf32>
    %45 = vector.broadcast %34 : vector<1x128xf32> to vector<4x128xf32>
    %46 = arith.addf %44, %45 : vector<4x128xf32>
    %cst_33 = arith.constant 0.000000e+00 : f32
    %47 = vector.broadcast %cst_33 : f32 to vector<4x128xf32>
    %48 = arith.maximumf %46, %47 : vector<4x128xf32>
    %c0_34 = arith.constant 0 : index
    %c0_35 = arith.constant 0 : index
    %49 = vector.load %arg14[%c0_34, %c0_35] : memref<128x128xf32, #tpu.memory_space<vmem>>, vector<128x128xf32>
    %cst_36 = arith.constant dense<0.000000e+00> : vector<4x128xf32>
    %50 = tpu.matmul %48, %49, %cst_36 {dimension_numbers = #tpu.dot_dimension_numbers<[1], [0], [0], [1], [0, 0, 1, 1], [], []>} : vector<4x128xf32>, vector<128x128xf32>, vector<4x128xf32> -> vector<4x128xf32>
    %c0_37 = arith.constant 0 : index
    %c0_38 = arith.constant 0 : index
    %51 = vector.load %arg15[%c0_37, %c0_38] : memref<1x128xf32, #tpu.memory_space<vmem>>, vector<1x128xf32>
    %52 = vector.broadcast %51 : vector<1x128xf32> to vector<4x128xf32>
    %53 = arith.addf %50, %52 : vector<4x128xf32>
    %c0_39 = arith.constant 0 : index
    %c0_40 = arith.constant 0 : index
    %54 = vector.load %arg13[%c0_39, %c0_40] : memref<128x128xf32, #tpu.memory_space<vmem>>, vector<128x128xf32>
    %c0_41 = arith.constant 0 : index
    %c0_42 = arith.constant 0 : index
    %55 = vector.load %arg16[%c0_41, %c0_42] : memref<1x128xf32, #tpu.memory_space<vmem>>, vector<1x128xf32>
    %c0_43 = arith.constant 0 : index
    %c0_44 = arith.constant 0 : index
    %56 = vector.load %arg17[%c0_43, %c0_44] : memref<1x128xf32, #tpu.memory_space<vmem>>, vector<1x128xf32>
    %cst_45 = arith.constant dense<0.000000e+00> : vector<4x128xf32>
    %57 = tpu.matmul %53, %54, %cst_45 {dimension_numbers = #tpu.dot_dimension_numbers<[1], [0], [0], [1], [0, 0, 1, 1], [], []>} : vector<4x128xf32>, vector<128x128xf32>, vector<4x128xf32> -> vector<4x128xf32>
    %58 = arith.subf %53, %57 : vector<4x128xf32>
    %59 = arith.mulf %58, %58 : vector<4x128xf32>
    %cst_46 = arith.constant dense<0.000000e+00> : vector<4x128xf32>
    %60 = tpu.matmul %59, %54, %cst_46 {dimension_numbers = #tpu.dot_dimension_numbers<[1], [0], [0], [1], [0, 0, 1, 1], [], []>} : vector<4x128xf32>, vector<128x128xf32>, vector<4x128xf32> -> vector<4x128xf32>
    %cst_47 = arith.constant 9.99999974E-6 : f32
    %61 = vector.broadcast %cst_47 : f32 to vector<4x128xf32>
    %62 = arith.addf %60, %61 : vector<4x128xf32>
    %63 = math.rsqrt %62 : vector<4x128xf32>
    %64 = arith.mulf %58, %63 : vector<4x128xf32>
    %65 = vector.broadcast %55 : vector<1x128xf32> to vector<4x128xf32>
    %66 = arith.mulf %64, %65 : vector<4x128xf32>
    %67 = vector.broadcast %56 : vector<1x128xf32> to vector<4x128xf32>
    %68 = arith.addf %66, %67 : vector<4x128xf32>
    %c0_48 = arith.constant 0 : index
    %c0_49 = arith.constant 0 : index
    %69 = vector.load %arg18[%c0_48, %c0_49] : memref<4x128xf32, #tpu.memory_space<vmem>>, vector<4x128xf32>
    tpu.vector_store %arg18[%c0_48, %c0_49], %68 {strides = array<i32>} : memref<4x128xf32, #tpu.memory_space<vmem>>, vector<4x128xf32>,
    return
  }
  func.func @transform_0(%arg0: i32) -> (i32, i32) {
    %c0_i32 = arith.constant 0 : i32
    %c0_i32_0 = arith.constant 0 : i32
    return %arg0, %c0_i32 : i32, i32
  }
  func.func @transform_1(%arg0: i32) -> (i32, i32) {
    %c0_i32 = arith.constant 0 : i32
    %c0_i32_0 = arith.constant 0 : i32
    %c0_i32_1 = arith.constant 0 : i32
    return %c0_i32, %c0_i32_0 : i32, i32
  }
  func.func @transform_2(%arg0: i32) -> (i32, i32) {
    %c0_i32 = arith.constant 0 : i32
    %c0_i32_0 = arith.constant 0 : i32
    %c0_i32_1 = arith.constant 0 : i32
    return %c0_i32, %c0_i32_0 : i32, i32
  }
  func.func @transform_3(%arg0: i32) -> (i32, i32) {
    %c0_i32 = arith.constant 0 : i32
    %c0_i32_0 = arith.constant 0 : i32
    %c0_i32_1 = arith.constant 0 : i32
    return %c0_i32, %c0_i32_0 : i32, i32
  }
  func.func @transform_4(%arg0: i32) -> (i32, i32) {
    %c0_i32 = arith.constant 0 : i32
    %c0_i32_0 = arith.constant 0 : i32
    %c0_i32_1 = arith.constant 0 : i32
    return %c0_i32, %c0_i32_0 : i32, i32
  }
  func.func @transform_5(%arg0: i32) -> (i32, i32) {
    %c0_i32 = arith.constant 0 : i32
    %c0_i32_0 = arith.constant 0 : i32
    %c0_i32_1 = arith.constant 0 : i32
    return %c0_i32, %c0_i32_0 : i32, i32
  }
  func.func @transform_6(%arg0: i32) -> (i32, i32) {
    %c0_i32 = arith.constant 0 : i32
    %c0_i32_0 = arith.constant 0 : i32
    %c0_i32_1 = arith.constant 0 : i32
    return %c0_i32, %c0_i32_0 : i32, i32
  }
  func.func @transform_7(%arg0: i32) -> (i32, i32) {
    %c0_i32 = arith.constant 0 : i32
    %c0_i32_0 = arith.constant 0 : i32
    %c0_i32_1 = arith.constant 0 : i32
    return %c0_i32, %c0_i32_0 : i32, i32
  }
  func.func @transform_8(%arg0: i32) -> (i32, i32) {
    %c0_i32 = arith.constant 0 : i32
    %c0_i32_0 = arith.constant 0 : i32
    return %arg0, %c0_i32 : i32, i32
  }
  func.func @transform_9(%arg0: i32) -> (i32, i32) {
    %c0_i32 = arith.constant 0 : i32
    %c0_i32_0 = arith.constant 0 : i32
    return %arg0, %c0_i32 : i32, i32
  }
  func.func @transform_10(%arg0: i32) -> (i32, i32) {
    %c0_i32 = arith.constant 0 : i32
    %c0_i32_0 = arith.constant 0 : i32
    %c0_i32_1 = arith.constant 0 : i32
    return %c0_i32, %c0_i32_0 : i32, i32
  }
  func.func @transform_11(%arg0: i32) -> (i32, i32) {
    %c0_i32 = arith.constant 0 : i32
    %c0_i32_0 = arith.constant 0 : i32
    %c0_i32_1 = arith.constant 0 : i32
    return %c0_i32, %c0_i32_0 : i32, i32
  }
  func.func @transform_12(%arg0: i32) -> (i32, i32) {
    %c0_i32 = arith.constant 0 : i32
    %c0_i32_0 = arith.constant 0 : i32
    %c0_i32_1 = arith.constant 0 : i32
    return %c0_i32, %c0_i32_0 : i32, i32
  }
  func.func @transform_13(%arg0: i32) -> (i32, i32) {
    %c0_i32 = arith.constant 0 : i32
    %c0_i32_0 = arith.constant 0 : i32
    %c0_i32_1 = arith.constant 0 : i32
    return %c0_i32, %c0_i32_0 : i32, i32
  }
  func.func @transform_14(%arg0: i32) -> (i32, i32) {
    %c0_i32 = arith.constant 0 : i32
    %c0_i32_0 = arith.constant 0 : i32
    %c0_i32_1 = arith.constant 0 : i32
    return %c0_i32, %c0_i32_0 : i32, i32
  }
  func.func @transform_15(%arg0: i32) -> (i32, i32) {
    %c0_i32 = arith.constant 0 : i32
    %c0_i32_0 = arith.constant 0 : i32
    %c0_i32_1 = arith.constant 0 : i32
    return %c0_i32, %c0_i32_0 : i32, i32
  }
  func.func @transform_16(%arg0: i32) -> (i32, i32) {
    %c0_i32 = arith.constant 0 : i32
    %c0_i32_0 = arith.constant 0 : i32
    %c0_i32_1 = arith.constant 0 : i32
    return %c0_i32, %c0_i32_0 : i32, i32
  }
  func.func @transform_17(%arg0: i32) -> (i32, i32) {
    %c0_i32 = arith.constant 0 : i32
    %c0_i32_0 = arith.constant 0 : i32
    return %arg0, %c0_i32 : i32, i32
  }
}

</mosaic_0001>

<bundles_post_ra>
// kernel: tpu_custom_call.1
= control target key start
LH: loop header
LB: loop body
LE: loop exit
PB: predicated region body
PF: predicated region fallthrough
CT: control target
= control target key end

     0   :  { %s2065_s0 = inlined_call_operand.hbm [shape: f32[4,96], index: 0, kind: input, shape index: {}]   ;;  %s2066_s1 = inlined_call_operand.hbm [shape: f32[96,256], index: 1, kind: input, shape index: {}]   ;;  %s2067_s2 = inlined_call_operand.hbm [shape: f32[1,256], index: 2, kind: input, shape index: {}]   ;;  %s2068_s3 = inlined_call_operand.hbm [shape: f32[1,256], index: 3, kind: input, shape index: {}]   ;;  %s2069_s4 = inlined_call_operand.hbm [shape: f32[1,256], index: 4, kind: input, shape index: {}]   ;;  %s2070_s5 = inlined_call_operand.hbm [shape: f32[256,256], index: 5, kind: input, shape index: {}]   ;;  %s2071_s6 = inlined_call_operand.hbm [shape: f32[256,128], index: 6, kind: input, shape index: {}]   ;;  %s2072_s7 = inlined_call_operand.vmem [shape: f32[1,128], index: 7, kind: input, shape index: {}]   ;;  %s2073_s8 = inlined_call_operand.vmem [shape: f32[4,128], index: 8, kind: input, shape index: {}]   ;;  %s2074_s9 = inlined_call_operand.vmem [shape: f32[4,128], index: 9, kind: input, shape index: {}]   ;;  %s2075_s10 = inlined_call_operand.vmem [shape: f32[1,128], index: 10, kind: input, shape index: {}]   ;;  %s2076_s11 = inlined_call_operand.vmem [shape: f32[1,128], index: 11, kind: input, shape index: {}]   ;;  %s2077_s12 = inlined_call_operand.hbm [shape: f32[128,128], index: 12, kind: input, shape index: {}]   ;;  %s2078_s13 = inlined_call_operand.hbm [shape: f32[128,128], index: 13, kind: input, shape index: {}]   ;;  %s2079_s14 = inlined_call_operand.vmem [shape: f32[1,128], index: 14, kind: input, shape index: {}]   ;;  %s2080_s15 = inlined_call_operand.vmem [shape: f32[1,128], index: 15, kind: input, shape index: {}]   ;;  %s2081_s16 = inlined_call_operand.vmem [shape: f32[1,128], index: 16, kind: input, shape index: {}]   ;;  %s2082_s17 = inlined_call_operand.hbm [shape: f32[4,128], index: 17, kind: output, shape index: {}]  }
   0x1   :  { %2083 = sst [smem:[#allocation24_spill]] %s2065_s0 }
   0x2   :  { %2084 = sst [smem:[#allocation25_spill]] %s2066_s1 }
   0x3   :  { %22 = vsyncpa [#allocation3], 0 }
   0x4   :  { %23 = vsyncpa [#allocation6], 0 }
   0x5   :  { %24 = vsyncpa [#allocation9], 0 }
   0x6   :  { %25 = vsyncpa [#allocation12], 0 }
   0x7   :  { %26 = vsyncpa [#allocation15], 0 }
   0x8   :  { %27 = vsyncpa [#allocation4], 0  ;;  %s1628_s24 = smov [#allocation5]  }
   0x9   :  { %s43_s25 = sshll.u32 %s1628_s24, 4  ;;  %s44_s25 = int_to_ptr.vmem [resolvable:$true] %s43_s25 }
   0xa   :  { %s1424_s26 = scalar_lea.vmem %s44_s25, 3072  ;;  %p1429_p1 = scmp.lt.s32.totalorder %s44_s25, %s44_s25 }
   0xb   :  { %p1425_p0 = scmp.ne.s32.totalorder %s44_s25, %s1424_s26  ;;  %p1430_p2 = scmp.lt.s32.totalorder %s1424_s26, %s1424_s26 }
   0xd   :  { %p1431_p3 = por %p1430_p2, %p1429_p1 }
   0xf   :  { %p1432_p4 = pnand %p1431_p3, %p1425_p0 }
  0x11   :  { %1435 = shalt.err (!%p1432_p4)
}
  0x12   :  { %s1629_s27 = smov 256   ;;  %s1630_s28 = smov 16  }
  0x13   :  { %s2085_s30 = sld [smem:[#allocation25_spill]]  ;;  %s1631_s18 = smov [#allocation8]  }
  0x14   :  { %s66_s19 = sshll.u32 %s1631_s18, 4  ;;  %s1632_s1 = smov [#allocation11]   ;;  %s67_s19 = int_to_ptr.vmem [resolvable:$true] %s66_s19 }
  0x15   :  { %s85_s20 = sshll.u32 %s1632_s1, 4  ;;  %s1444_s21 = scalar_lea.vmem %s67_s19, 32  ;;  %s86_s20 = int_to_ptr.vmem [resolvable:$true] %s85_s20 }
  0x16   :  { %p1445_p5 = scmp.ne.s32.totalorder %s67_s19, %s1444_s21  ;;  %p1449_p6 = scmp.lt.s32.totalorder %s67_s19, %s67_s19 }
  0x17   :  { %p1450_p7 = scmp.lt.s32.totalorder %s1444_s21, %s1444_s21 }
  0x19   :  { %49 = dma.hbm_to_vmem [thread:$0]  %s2085_s30, 3072, %s44_s25, [#allocation6], %s1629_s27, %s1629_s27, %s1630_s28  }
  0x1a   :  { %p1451_p8 = por %p1450_p7, %p1449_p6 }
  0x1c   :  { %p1452_p9 = pnand %p1451_p8, %p1445_p5 }
  0x1e   :  { %1455 = shalt.err (!%p1452_p9)
}
  0x1f   :  { %69 = dma.hbm_to_vmem [thread:$0]  %s2068_s3, 32, %s67_s19, [#allocation9]  }
  0x20   :  { %s1464_s24 = scalar_lea.vmem %s86_s20, 8192  ;;  %p1469_p11 = scmp.lt.s32.totalorder %s86_s20, %s86_s20 }
  0x21   :  { %p1465_p10 = scmp.ne.s32.totalorder %s86_s20, %s1464_s24  ;;  %p1470_p12 = scmp.lt.s32.totalorder %s1464_s24, %s1464_s24 }
  0x23   :  { %p1471_p13 = por %p1470_p12, %p1469_p11 }
  0x25   :  { %p1472_p0 = pnand %p1471_p13, %p1465_p10 }
  0x27   :  { %1475 = shalt.err (!%p1472_p0)
}
  0x28   :  { %91 = dma.hbm_to_vmem [thread:$0]  %s2070_s5, 8192, %s86_s20, [#allocation12], %s1629_s27, %s1629_s27, %s1630_s28  }
  0x29   :  { %s1633_s29 = smov [#allocation14]   ;;  %s1634_s30 = smov [#allocation2]  }
  0x2a   :  { %s119_s0 = sshll.u32 %s1633_s29, 4  ;;  %s34_s18 = sshll.u32 %s1634_s30, 4  ;;  %s120_s0 = int_to_ptr.vmem [resolvable:$true] %s119_s0  ;;  %s35_s18 = int_to_ptr.vmem [resolvable:$true] %s34_s18 }
  0x2b   :  { %s1484_s1 = scalar_lea.vmem %s120_s0, 2048  ;;  %p1489_p2 = scmp.lt.s32.totalorder %s120_s0, %s120_s0 }
  0x2c   :  { %p1485_p1 = scmp.ne.s32.totalorder %s120_s0, %s1484_s1  ;;  %p1490_p3 = scmp.lt.s32.totalorder %s1484_s1, %s1484_s1 }
  0x2e   :  { %p1491_p4 = por %p1490_p3, %p1489_p2 }
  0x30   :  { %p1492_p5 = pnand %p1491_p4, %p1485_p1 }
  0x32   :  { %1495 = shalt.err (!%p1492_p5)
}
  0x33   :  { %s1635_s3 = smov 128   ;;  %s1636_s19 = smov 8  }
  0x34   :  { %125 = dma.hbm_to_vmem [thread:$0]  %s2077_s12, 2048, %s120_s0, [#allocation15], %s1635_s3, %s1635_s3, %s1636_s19  }
  0x35   :  { %s1504_s5 = scalar_lea.vmem %s35_s18, 64  ;;  %p1509_p7 = scmp.lt.s32.totalorder %s35_s18, %s35_s18 }
  0x36   :  { %p1505_p6 = scmp.ne.s32.totalorder %s35_s18, %s1504_s5  ;;  %p1510_p8 = scmp.lt.s32.totalorder %s1504_s5, %s1504_s5 }
  0x38   :  { %p1511_p9 = por %p1510_p8, %p1509_p7 }
  0x3a   :  { %p1512_p10 = pnand %p1511_p9, %p1505_p6 }
  0x3c   :  { %1515 = shalt.err (!%p1512_p10)
}
  0x3d   :  { %s2086_s20 = sld [smem:[#allocation24_spill]]  ;;  %s1637_s23 = smov [#allocation7]  }
  0x3e   :  { %s56_s24 = sshll.u32 %s1637_s23, 4  ;;  %s1638_s25 = smov [#allocation10]   ;;  %s57_s24 = int_to_ptr.vmem [resolvable:$true] %s56_s24 }
  0x3f   :  { %s76_s26 = sshll.u32 %s1638_s25, 4  ;;  %s1524_s29 = scalar_lea.vmem %s57_s24, 32  ;;  %s77_s26 = int_to_ptr.vmem [resolvable:$true] %s76_s26 }
  0x40   :  { %p1525_p11 = scmp.ne.s32.totalorder %s57_s24, %s1524_s29  ;;  %p1529_p12 = scmp.lt.s32.totalorder %s57_s24, %s57_s24 }
  0x41   :  { %p1530_p13 = scmp.lt.s32.totalorder %s1524_s29, %s1524_s29 }
  0x43   :  { %37 = dma.hbm_to_vmem [thread:$0]  %s2086_s20, 64, %s35_s18, [#allocation3]  }
  0x44   :  { %p1531_p0 = por %p1530_p13, %p1529_p12 }
  0x46   :  { %p1532_p1 = pnand %p1531_p0, %p1525_p11 }
  0x48   :  { %1535 = shalt.err (!%p1532_p1)
}
  0x49   :  { %59 = dma.hbm_to_vmem [thread:$0]  %s2067_s2, 32, %s57_s24, [#allocation6]  }
  0x4a   :  { %s1544_s30 = scalar_lea.vmem %s77_s26, 32  ;;  %p1549_p3 = scmp.lt.s32.totalorder %s77_s26, %s77_s26 }
  0x4b   :  { %p1545_p2 = scmp.ne.s32.totalorder %s77_s26, %s1544_s30  ;;  %p1550_p4 = scmp.lt.s32.totalorder %s1544_s30, %s1544_s30 }
  0x4d   :  { %p1551_p5 = por %p1550_p4, %p1549_p3 }
  0x4f   :  { %p1552_p6 = pnand %p1551_p5, %p1545_p2 }
  0x51   :  { %1555 = shalt.err (!%p1552_p6)
}
  0x52   :  { %79 = dma.hbm_to_vmem [thread:$0]  %s2069_s4, 32, %s77_s26, [#allocation9]  }
  0x53   :  { %s1639_s21 = smov [#allocation13]   ;;  %s1640_s5 = smov [#allocation16]  }
  0x54   :  { %s97_s22 = sshll.u32 %s1639_s21, 4  ;;  %s131_s27 = sshll.u32 %s1640_s5, 4  ;;  %s98_s22 = int_to_ptr.vmem [resolvable:$true] %s97_s22  ;;  %s132_s27 = int_to_ptr.vmem [resolvable:$true] %s131_s27 }
  0x55   :  { %s1564_s28 = scalar_lea.vmem %s98_s22, 4096  ;;  %p1569_p8 = scmp.lt.s32.totalorder %s98_s22, %s98_s22 }
  0x56   :  { %p1565_p7 = scmp.ne.s32.totalorder %s98_s22, %s1564_s28  ;;  %p1570_p9 = scmp.lt.s32.totalorder %s1564_s28, %s1564_s28 }
  0x58   :  { %p1571_p10 = por %p1570_p9, %p1569_p8 }
  0x5a   :  { %p1572_p11 = pnand %p1571_p10, %p1565_p7 }
  0x5c   :  { %1575 = shalt.err (!%p1572_p11)
}
  0x5d   :  { %103 = dma.hbm_to_vmem [thread:$0]  %s2071_s6, 4096, %s98_s22, [#allocation12], %s1635_s3, %s1635_s3, %s1636_s19  }
  0x5e   :  { %s1584_s4 = scalar_lea.vmem %s132_s27, 2048  ;;  %p1589_p13 = scmp.lt.s32.totalorder %s132_s27, %s132_s27 }
  0x5f   :  { %p1585_p12 = scmp.ne.s32.totalorder %s132_s27, %s1584_s4  ;;  %p1590_p0 = scmp.lt.s32.totalorder %s1584_s4, %s1584_s4 }
  0x61   :  { %p1591_p1 = por %p1590_p0, %p1589_p13 }
  0x63   :  { %p1592_p2 = pnand %p1591_p1, %p1585_p12 }
  0x65   :  { %1595 = shalt.err (!%p1592_p2)
}
  0x66   :  { %137 = dma.hbm_to_vmem [thread:$0]  %s2078_s13, 2048, %s132_s27, [#allocation15], %s1635_s3, %s1635_s3, %s1636_s19  }
  0x67   :  { %1616 = dma.done.wait [#allocation3], 64  }
  0x68   :  { %1617 = vsyncadd [#allocation3], 4294967232 }
  0x69   :  { %1618 = dma.done.wait [#allocation6], 3104  }
  0x6a   :  { %1619 = vsyncadd [#allocation6], 4294964192 }
  0x6b   :  { %1620 = dma.done.wait [#allocation9], 64  }
  0x6c   :  { %1621 = vsyncadd [#allocation9], 4294967232 }
  0x6d   :  { %1622 = dma.done.wait [#allocation12], 12288  }
  0x6e   :  { %1623 = vsyncadd [#allocation12], 4294955008 }
  0x6f   :  { %1624 = dma.done.wait [#allocation15], 4096  }
  0x70   :  { %1625 = vsyncadd [#allocation15], 4294963200  ;;  %v1641_v0 = vmov 0.0   ;;  %v195_v1 = vld [vmem:[#allocation5 + $0xb8] sm:$0xff]  ;;  %v194_v2 = vld [vmem:[#allocation5 + $0xb0] sm:$0xff]  ;;  %vm208_vm0 = vcmask 785408  }
  0x71   :  { %276 = vmatprep.mubr.f32.mxu0 %v1641_v0  ;;  %v193_v3 = vld [vmem:[#allocation5 + $0xa8] sm:$0xff]  ;;  %220 = vmatprep.subr.mxu0 %v195_v1  ;;  %v192_v4 = vld [vmem:[#allocation5 + $0xa0] sm:$0xff]  ;;  %v191_v5 = vld [vmem:[#allocation5 + $0x98] sm:$0xff]  ;;  %vm1642_vm1 = vmmov 0   ;;  %s1643_s18 = smov [#allocation17]  }
  0x72   :  { %221 = vmatpush1.msra.mxu0 %v194_v2  ;;  %v190_v6 = vld [vmem:[#allocation5 + $0x90] sm:$0xff]  ;;  %v189_v7 = vld [vmem:[#allocation5 + $0x88] sm:$0xff]  ;;  %v188_v8 = vld [vmem:[#allocation5 + $0x80] sm:$0xff]  ;;  %s1077_s1 = sshll.u32 %s1643_s18, 4  ;;  %s1078_s1 = int_to_ptr.vmem [resolvable:$true] %s1077_s1 }
  0x73   :  { %222 = vmatprep.subr.mxu0 %v193_v3  ;;  %v187_v9 = vld [vmem:[#allocation5 + $0x78] sm:$0xff]  ;;  %v186_v10 = vld [vmem:[#allocation5 + $0x70] sm:$0xff]  ;;  %v185_v11 = vld [vmem:[#allocation5 + $0x68] sm:$0xff]  ;;  %s1596_s21 = scalar_lea.vmem %s1078_s1, 64  ;;  %p1601_p4 = scmp.lt.s32.totalorder %s1078_s1, %s1078_s1 }
  0x74   :  { %223 = vmatpush1.msra.mxu0 %v192_v4  ;;  %v1771_v12 = vld [vmem:[#allocation11 + $0xf8] sm:$0xff]  ;;  %v1773_v13 = vld [vmem:[#allocation11 + $0xf0] sm:$0xff]  ;;  %v1776_v15 = vld [vmem:[#allocation11 + $0xe8] sm:$0xff]  ;;  %p1597_p3 = scmp.ne.s32.totalorder %s1078_s1, %s1596_s21  ;;  %p1602_p5 = scmp.lt.s32.totalorder %s1596_s21, %s1596_s21 }
  0x75   :  { %224 = vmatprep.subr.mxu0 %v191_v5  ;;  %v184_v14 = vld [vmem:[#allocation5 + $0x60] sm:$0xff]  ;;  %349 = vmatprep.subr.mxu1 %v1771_v12  ;;  %v183_v17 = vld [vmem:[#allocation5 + $0x58] sm:$0xff]  ;;  %v182_v19 = vld [vmem:[#allocation5 + $0x50] sm:$0xff] }
  0x76   :  { %225 = vmatpush1.msra.mxu0 %v190_v6  ;;  %v1778_v16 = vld [vmem:[#allocation11 + $0xe0] sm:$0xff]  ;;  %350 = vmatpush1.msra.mxu1 %v1773_v13  ;;  %v1781_v18 = vld [vmem:[#allocation11 + $0xd8] sm:$0xff]  ;;  %v1784_v20 = vld [vmem:[#allocation11 + $0xd0] sm:$0xff]  ;;  %p1603_p6 = por %p1602_p5, %p1601_p4 }
  0x77   :  { %226 = vmatprep.subr.mxu0 %v189_v7  ;;  %351 = vmatprep.subr.mxu1 %v1776_v15  ;;  %v181_v21 = vld [vmem:[#allocation5 + $0x48] sm:$0xff]  ;;  %v180_v23 = vld [vmem:[#allocation5 + $0x40] sm:$0xff]  ;;  %v179_v25 = vld [vmem:[#allocation5 + $0x38] sm:$0xff] }
  0x78   :  { %227 = vmatpush1.msra.mxu0 %v188_v8  ;;  %352 = vmatpush1.msra.mxu1 %v1778_v16  ;;  %v1787_v22 = vld [vmem:[#allocation11 + $0xc8] sm:$0xff]  ;;  %v1790_v24 = vld [vmem:[#allocation11 + $0xc0] sm:$0xff]  ;;  %v1793_v26 = vld [vmem:[#allocation11 + $0xb8] sm:$0xff]  ;;  %p1604_p7 = pnand %p1603_p6, %p1597_p3 }
  0x79   :  { %228 = vmatprep.subr.mxu0 %v187_v9  ;;  %353 = vmatprep.subr.mxu1 %v1781_v18  ;;  %v178_v27 = vld [vmem:[#allocation5 + $0x30] sm:$0xff]  ;;  %v177_v29 = vld [vmem:[#allocation5 + $0x28] sm:$0xff]  ;;  %v176_v31 = vld [vmem:[#allocation5 + $0x20] sm:$0xff] }
  0x7a   :  { %229 = vmatpush1.msra.mxu0 %v186_v10  ;;  %354 = vmatpush1.msra.mxu1 %v1784_v20  ;;  %v1796_v28 = vld [vmem:[#allocation11 + $0xb0] sm:$0xff]  ;;  %v1799_v30 = vld [vmem:[#allocation11 + $0xa8] sm:$0xff]  ;;  %v1802_v32 = vld [vmem:[#allocation11 + $0xa0] sm:$0xff] }
  0x7b   :  { %230 = vmatprep.subr.mxu0 %v185_v11  ;;  %355 = vmatprep.subr.mxu1 %v1787_v22  ;;  %v175_v33 = vld [vmem:[#allocation5 + $0x18] sm:$0xff]  ;;  %v174_v35 = vld [vmem:[#allocation5 + $0x10] sm:$0xff]  ;;  %v173_v37 = vld [vmem:[#allocation5 + $0x8] sm:$0xff] }
  0x7c   :  { %231 = vmatpush1.msra.mxu0 %v184_v14  ;;  %356 = vmatpush1.msra.mxu1 %v1790_v24  ;;  %v1805_v34 = vld [vmem:[#allocation11 + $0x98] sm:$0xff]  ;;  %v1808_v36 = vld [vmem:[#allocation11 + $0x90] sm:$0xff]  ;;  %v300_v38 = vld [vmem:[#allocation11 + $0x88] sm:$0xff] }
  0x7d   :  { %232 = vmatprep.subr.mxu0 %v183_v17  ;;  %357 = vmatprep.subr.mxu1 %v1793_v26  ;;  %v172_v39 = vld [vmem:[#allocation5] sm:$0xff]  ;;  %v171_v41 = vld [vmem:[#allocation2] sm:$0xf]  ;;  %v296_v44 = vld [vmem:[#allocation11 + $0x68] sm:$0xff] }
  0x7e   :  { %233 = vmatpush1.msra.mxu0 %v182_v19  ;;  %358 = vmatpush1.msra.mxu1 %v1796_v28  ;;  %v299_v40 = vld [vmem:[#allocation11 + $0x80] sm:$0xff]  ;;  %v298_v42 = vld [vmem:[#allocation11 + $0x78] sm:$0xff]  ;;  %v297_v43 = vld [vmem:[#allocation11 + $0x70] sm:$0xff] }
  0x7f   :  { %234 = vmatprep.subr.mxu0 %v181_v21  ;;  %359 = vmatprep.subr.mxu1 %v1799_v30  ;;  %v295_v45 = vld [vmem:[#allocation11 + $0x60] sm:$0xff]  ;;  %v294_v46 = vld [vmem:[#allocation11 + $0x58] sm:$0xff]  ;;  %v293_v47 = vld [vmem:[#allocation11 + $0x50] sm:$0xff] }
  0x80   :  { %235 = vmatpush1.msra.mxu0 %v180_v23  ;;  %360 = vmatpush1.msra.mxu1 %v1802_v32  ;;  %v292_v48 = vld [vmem:[#allocation11 + $0x48] sm:$0xff]  ;;  %v291_v49 = vld [vmem:[#allocation11 + $0x40] sm:$0xff]  ;;  %v290_v50 = vld [vmem:[#allocation11 + $0x38] sm:$0xff] }
  0x81   :  { %236 = vmatprep.subr.mxu0 %v179_v25  ;;  %361 = vmatprep.subr.mxu1 %v1805_v34  ;;  %v289_v51 = vld [vmem:[#allocation11 + $0x30] sm:$0xff]  ;;  %v288_v52 = vld [vmem:[#allocation11 + $0x28] sm:$0xff]  ;;  %v287_v53 = vld [vmem:[#allocation11 + $0x20] sm:$0xff] }
  0x82   :  { %237 = vmatpush1.msra.mxu0 %v178_v27  ;;  %362 = vmatpush1.msra.mxu1 %v1808_v36  ;;  %v286_v54 = vld [vmem:[#allocation11 + $0x18] sm:$0xff]  ;;  %v285_v55 = vld [vmem:[#allocation11 + $0x10] sm:$0xff]  ;;  %v284_v56 = vld [vmem:[#allocation11 + $0x8] sm:$0xff]  ;;  %v198_v27 = vlaneseq }
  0x83   :  { %238 = vmatprep.subr.mxu0 %v177_v29  ;;  %363 = vmatprep.subr.mxu1 %v300_v38  ;;  %v283_v57 = vld [vmem:[#allocation11] sm:$0xff]  ;;  %v346_v58 = vld [vmem:[#allocation11 + $0x1f8] sm:$0xff]  ;;  %v345_v59 = vld [vmem:[#allocation11 + $0x1f0] sm:$0xff] }
  0x84   :  { %239 = vmatpush1.msra.mxu0 %v176_v31  ;;  %364 = vmatpush1.msra.mxu1 %v299_v40  ;;  %v344_v60 = vld [vmem:[#allocation11 + $0x1e8] sm:$0xff]  ;;  %v343_v61 = vld [vmem:[#allocation11 + $0x1e0] sm:$0xff]  ;;  %v342_v62 = vld [vmem:[#allocation11 + $0x1d8] sm:$0xff] }
  0x85   :  { %240 = vmatprep.subr.mxu0 %v175_v33  ;;  %365 = vmatprep.subr.mxu1 %v298_v42  ;;  %v341_v63 = vld [vmem:[#allocation11 + $0x1d0] sm:$0xff]  ;;  %v340_v1 = vld [vmem:[#allocation11 + $0x1c8] sm:$0xff]  ;;  %v339_v2 = vld [vmem:[#allocation11 + $0x1c0] sm:$0xff] }
  0x86   :  { %241 = vmatpush1.msra.mxu0 %v174_v35  ;;  %366 = vmatpush1.msra.mxu1 %v297_v43  ;;  %v338_v3 = vld [vmem:[#allocation11 + $0x1b8] sm:$0xff]  ;;  %v337_v4 = vld [vmem:[#allocation11 + $0x1b0] sm:$0xff]  ;;  %v336_v5 = vld [vmem:[#allocation11 + $0x1a8] sm:$0xff] }
  0x87   :  { %242 = vmatprep.subr.mxu0 %v173_v37  ;;  %367 = vmatprep.subr.mxu1 %v296_v44  ;;  %v335_v6 = vld [vmem:[#allocation11 + $0x1a0] sm:$0xff]  ;;  %v334_v7 = vld [vmem:[#allocation11 + $0x198] sm:$0xff]  ;;  %v333_v8 = vld [vmem:[#allocation11 + $0x190] sm:$0xff] }
  0x88   :  { %243 = vmatpush1.msra.mxu0 %v172_v39  ;;  %368 = vmatpush1.msra.mxu1 %v295_v45  ;;  %v332_v9 = vld [vmem:[#allocation11 + $0x188] sm:$0xff]  ;;  %v331_v10 = vld [vmem:[#allocation11 + $0x180] sm:$0xff]  ;;  %v330_v11 = vld [vmem:[#allocation11 + $0x178] sm:$0xff] }
  0x89   :  { %1090 = vmatmul.mubr.msk.f32.vlgmr.msra.gmra.mxu0 %vm208_vm0, %v171_v41  ;;  %424 = vmatprep.subr.mxu0 %v1771_v12  ;;  %v329_v12 = vld [vmem:[#allocation11 + $0x170] sm:$0xff]  ;;  %v327_v14 = vld [vmem:[#allocation11 + $0x160] sm:$0xff]  ;;  %v324_v17 = vld [vmem:[#allocation11 + $0x148] sm:$0xff] }
  0x8a   :  { %425 = vmatpush1.msra.mxu0 %v1773_v13  ;;  %369 = vmatprep.subr.mxu1 %v294_v46  ;;  %v328_v13 = vld [vmem:[#allocation11 + $0x168] sm:$0xff]  ;;  %v322_v19 = vld [vmem:[#allocation11 + $0x138] sm:$0xff]  ;;  %v541_v41 = vld [vmem:[#allocation13 + $0x70] sm:$0xff] }
  0x8b   :  { %426 = vmatprep.subr.mxu0 %v1776_v15  ;;  %370 = vmatpush1.msra.mxu1 %v293_v47  ;;  %v326_v15 = vld [vmem:[#allocation11 + $0x158] sm:$0xff]  ;;  %v320_v21 = vld [vmem:[#allocation11 + $0x128] sm:$0xff] }
  0x8c   :  { %427 = vmatpush1.msra.mxu0 %v1778_v16  ;;  %371 = vmatprep.subr.mxu1 %v292_v48  ;;  %v325_v16 = vld [vmem:[#allocation11 + $0x150] sm:$0xff]  ;;  %v318_v23 = vld [vmem:[#allocation11 + $0x118] sm:$0xff]  ;;  %v316_v25 = vld [vmem:[#allocation11 + $0x108] sm:$0xff] }
  0x8d   :  { %428 = vmatprep.subr.mxu0 %v1781_v18  ;;  %372 = vmatpush1.msra.mxu1 %v291_v49  ;;  %v323_v18 = vld [vmem:[#allocation11 + $0x140] sm:$0xff]  ;;  %v196_v31 = vld [vmem:[#allocation7] sm:$0x3] }
  0x8e   :  { %429 = vmatpush1.msra.mxu0 %v1784_v20  ;;  %373 = vmatprep.subr.mxu1 %v290_v50  ;;  %v321_v20 = vld [vmem:[#allocation11 + $0x130] sm:$0xff]  ;;  %v542_v39 = vld [vmem:[#allocation13 + $0x78] sm:$0xff] }
  0x8f   :  { %430 = vmatprep.subr.mxu0 %v1787_v22  ;;  %374 = vmatpush1.msra.mxu1 %v289_v51  ;;  %v319_v22 = vld [vmem:[#allocation11 + $0x120] sm:$0xff] }
  0x90   :  { %431 = vmatpush1.msra.mxu0 %v1790_v24  ;;  %375 = vmatprep.subr.mxu1 %v288_v52  ;;  %v317_v24 = vld [vmem:[#allocation11 + $0x110] sm:$0xff] }
  0x91   :  { %432 = vmatprep.subr.mxu0 %v1793_v26  ;;  %376 = vmatpush1.msra.mxu1 %v287_v53  ;;  %v315_v26 = vld [vmem:[#allocation11 + $0x100] sm:$0xff] }
  0x92   :  { %433 = vmatpush1.msra.mxu0 %v1796_v28  ;;  %377 = vmatprep.subr.mxu1 %v286_v54  ;;  %v199_v28 = vshrl.u32 %v198_v27, 7  ;;  %v347_v27 = vld [vmem:[#allocation8] sm:$0x3] }
  0x93   :  { %434 = vmatprep.subr.mxu0 %v1799_v30  ;;  %378 = vmatpush1.msra.mxu1 %v285_v55 }
  0x94   :  { %435 = vmatpush1.msra.mxu0 %v1802_v32  ;;  %379 = vmatprep.subr.mxu1 %v284_v56  ;;  %v1828_v29 = vsub.s32 1, %v199_v28  ;;  %v1830_v30 = vsub.s32 0, %v199_v28  ;;  %v348_v28 = vld [vmem:[#allocation10] sm:$0x3] }
  0x95   :  { %436 = vmatprep.subr.mxu0 %v1805_v34  ;;  %380 = vmatpush1.msra.mxu1 %v283_v57 }
  0x96   :  { %437 = vmatpush1.msra.mxu0 %v1808_v36  ;;  %381 = vmatprep.subr.mxu1 %v346_v58  ;;  %v205_v32 = vrot.slane %v196_v31, %v1828_v29  ;;  %v201_v33 = vrot.slane %v196_v31, %v1830_v30  ;;  %v503_v31 = vrot.slane %v347_v27, %v1830_v30 }
  0x97   :  { %438 = vmatprep.subr.mxu0 %v300_v38  ;;  %382 = vmatpush2.msra.mxu1 %v345_v59  ;;  %v558_v38 = vld [vmem:[#allocation13 + $0xf8] sm:$0xff] }
  0x98   :  { %439 = vmatpush1.msra.mxu0 %v299_v40  ;;  %383 = vmatprep.subr.mxu1 %v344_v60  ;;  %v557_v40 = vld [vmem:[#allocation13 + $0xf0] sm:$0xff] }
  0x99   :  { %440 = vmatprep.subr.mxu0 %v298_v42  ;;  %384 = vmatpush2.msra.mxu1 %v343_v61 }
  0x9a   :  { %441 = vmatpush1.msra.mxu0 %v297_v43  ;;  %385 = vmatprep.subr.mxu1 %v342_v62 }
  0x9b   :  { %442 = vmatprep.subr.mxu0 %v296_v44  ;;  %386 = vmatpush2.msra.mxu1 %v341_v63 }
  0x9c   :  { %443 = vmatpush1.msra.mxu0 %v295_v45  ;;  %387 = vmatprep.subr.mxu1 %v340_v1 }
  0x9d   :  { %444 = vmatprep.subr.mxu0 %v294_v46  ;;  %388 = vmatpush2.msra.mxu1 %v339_v2 }
  0x9e   :  { %445 = vmatpush1.msra.mxu0 %v293_v47  ;;  %389 = vmatprep.subr.mxu1 %v338_v3 }
  0x9f   :  { %446 = vmatprep.subr.mxu0 %v292_v48  ;;  %390 = vmatpush2.msra.mxu1 %v337_v4  ;;  %v556_v48 = vld [vmem:[#allocation13 + $0xe8] sm:$0xff] }
  0xa0   :  { %447 = vmatpush1.msra.mxu0 %v291_v49  ;;  %391 = vmatprep.subr.mxu1 %v336_v5  ;;  %v540_v49 = vld [vmem:[#allocation13 + $0x68] sm:$0xff] }
  0xa1   :  { %448 = vmatprep.subr.mxu0 %v290_v50  ;;  %392 = vmatpush2.msra.mxu1 %v335_v6  ;;  %v555_v50 = vld [vmem:[#allocation13 + $0xe0] sm:$0xff] }
  0xa2   :  { %449 = vmatpush1.msra.mxu0 %v289_v51  ;;  %393 = vmatprep.subr.mxu1 %v334_v7  ;;  %v539_v51 = vld [vmem:[#allocation13 + $0x60] sm:$0xff] }
  0xa3   :  { %450 = vmatprep.subr.mxu0 %v288_v52  ;;  %394 = vmatpush2.msra.mxu1 %v333_v8  ;;  %v554_v52 = vld [vmem:[#allocation13 + $0xd8] sm:$0xff] }
  0xa4   :  { %451 = vmatpush1.msra.mxu0 %v287_v53  ;;  %395 = vmatprep.subr.mxu1 %v332_v9  ;;  %v538_v53 = vld [vmem:[#allocation13 + $0x58] sm:$0xff] }
  0xa5   :  { %452 = vmatprep.subr.mxu0 %v286_v54  ;;  %396 = vmatpush2.msra.mxu1 %v331_v10  ;;  %v553_v54 = vld [vmem:[#allocation13 + $0xd0] sm:$0xff] }
  0xa6   :  { %453 = vmatpush1.msra.mxu0 %v285_v55  ;;  %397 = vmatprep.subr.mxu1 %v330_v11  ;;  %v537_v55 = vld [vmem:[#allocation13 + $0x50] sm:$0xff] }
  0xa7   :  { %454 = vmatprep.subr.mxu0 %v284_v56  ;;  %398 = vmatpush2.msra.mxu1 %v329_v12  ;;  %v552_v56 = vld [vmem:[#allocation13 + $0xc8] sm:$0xff] }
  0xa8   :  { %455 = vmatpush1.msra.mxu0 %v283_v57  ;;  %399 = vmatprep.subr.mxu1 %v328_v13  ;;  %v536_v57 = vld [vmem:[#allocation13 + $0x48] sm:$0xff] }
  0xa9   :  { %456 = vmatprep.subr.mxu0 %v346_v58  ;;  %400 = vmatpush2.msra.mxu1 %v327_v14  ;;  %v551_v58 = vld [vmem:[#allocation13 + $0xc0] sm:$0xff] }
  0xaa   :  { %457 = vmatpush2.msra.mxu0 %v345_v59  ;;  %401 = vmatprep.subr.mxu1 %v326_v15  ;;  %v535_v59 = vld [vmem:[#allocation13 + $0x40] sm:$0xff] }
  0xab   :  { %458 = vmatprep.subr.mxu0 %v344_v60  ;;  %402 = vmatpush2.msra.mxu1 %v325_v16  ;;  %v550_v60 = vld [vmem:[#allocation13 + $0xb8] sm:$0xff] }
  0xac   :  { %459 = vmatpush2.msra.mxu0 %v343_v61  ;;  %403 = vmatprep.subr.mxu1 %v324_v17  ;;  %v534_v61 = vld [vmem:[#allocation13 + $0x38] sm:$0xff] }
  0xad   :  { %460 = vmatprep.subr.mxu0 %v342_v62  ;;  %404 = vmatpush2.msra.mxu1 %v323_v18  ;;  %v549_v62 = vld [vmem:[#allocation13 + $0xb0] sm:$0xff] }
  0xae   :  { %461 = vmatpush2.msra.mxu0 %v341_v63  ;;  %405 = vmatprep.subr.mxu1 %v322_v19  ;;  %v533_v63 = vld [vmem:[#allocation13 + $0x30] sm:$0xff] }
  0xaf   :  { %462 = vmatprep.subr.mxu0 %v340_v1  ;;  %406 = vmatpush2.msra.mxu1 %v321_v20  ;;  %v548_v1 = vld [vmem:[#allocation13 + $0xa8] sm:$0xff] }
  0xb0   :  { %463 = vmatpush2.msra.mxu0 %v339_v2  ;;  %407 = vmatprep.subr.mxu1 %v320_v21  ;;  %v532_v2 = vld [vmem:[#allocation13 + $0x28] sm:$0xff] }
  0xb1   :  { %464 = vmatprep.subr.mxu0 %v338_v3  ;;  %408 = vmatpush2.msra.mxu1 %v319_v22  ;;  %v547_v3 = vld [vmem:[#allocation13 + $0xa0] sm:$0xff] }
  0xb2   :  { %465 = vmatpush2.msra.mxu0 %v337_v4  ;;  %409 = vmatprep.subr.mxu1 %v318_v23  ;;  %v531_v4 = vld [vmem:[#allocation13 + $0x20] sm:$0xff] }
  0xb3   :  { %466 = vmatprep.subr.mxu0 %v336_v5  ;;  %410 = vmatpush2.msra.mxu1 %v317_v24  ;;  %v546_v5 = vld [vmem:[#allocation13 + $0x98] sm:$0xff] }
  0xb4   :  { %467 = vmatpush2.msra.mxu0 %v335_v6  ;;  %411 = vmatprep.subr.mxu1 %v316_v25  ;;  %v530_v6 = vld [vmem:[#allocation13 + $0x18] sm:$0xff] }
  0xb5   :  { %468 = vmatprep.subr.mxu0 %v334_v7  ;;  %412 = vmatpush2.msra.mxu1 %v315_v26  ;;  %v545_v7 = vld [vmem:[#allocation13 + $0x90] sm:$0xff] }
  0xb6   :  { %469 = vmatpush2.msra.mxu0 %v333_v8  ;;  %1097 = vmatprep.subr.mxu1 %v558_v38  ;;  %v529_v8 = vld [vmem:[#allocation13 + $0x10] sm:$0xff]  ;;  %v520_v38 = vrot.slane %v348_v28, %v1828_v29 }
  0xb7   :  { %470 = vmatprep.subr.mxu0 %v332_v9  ;;  %v544_v9 = vld [vmem:[#allocation13 + $0x88] sm:$0xff] }
  0xb8   :  { %471 = vmatpush2.msra.mxu0 %v331_v10  ;;  %v528_v10 = vld [vmem:[#allocation13 + $0x8] sm:$0xff] }
  0xb9   :  { %472 = vmatprep.subr.mxu0 %v330_v11  ;;  %v543_v11 = vld [vmem:[#allocation13 + $0x80] sm:$0xff] }
  0xba   :  { %473 = vmatpush2.msra.mxu0 %v329_v12  ;;  %v527_v12 = vld [vmem:[#allocation13] sm:$0xff] }
  0xbb   :  { %474 = vmatprep.subr.mxu0 %v328_v13  ;;  %v1842_v13 = vld [vmem:[#allocation14 + $0x78] sm:$0xff] }
  0xbc   :  { %475 = vmatpush2.msra.mxu0 %v327_v14  ;;  %v1844_v14 = vld [vmem:[#allocation14 + $0x70] sm:$0xff] }
  0xbd   :  { %476 = vmatprep.subr.mxu0 %v326_v15  ;;  %v1849_v15 = vld [vmem:[#allocation14 + $0x68] sm:$0xff] }
  0xbe   :  { %477 = vmatpush2.msra.mxu0 %v325_v16  ;;  %v1853_v16 = vld [vmem:[#allocation14 + $0x60] sm:$0xff] }
  0xbf   :  { %478 = vmatprep.subr.mxu0 %v324_v17  ;;  %v1857_v17 = vld [vmem:[#allocation14 + $0x58] sm:$0xff] }
  0xc0   :  { %479 = vmatpush2.msra.mxu0 %v323_v18  ;;  %v1861_v18 = vld [vmem:[#allocation14 + $0x50] sm:$0xff] }
  0xc1   :  { %480 = vmatprep.subr.mxu0 %v322_v19  ;;  %v1865_v19 = vld [vmem:[#allocation14 + $0x48] sm:$0xff] }
  0xc2   :  { %481 = vmatpush2.msra.mxu0 %v321_v20  ;;  %v1869_v20 = vld [vmem:[#allocation14 + $0x40] sm:$0xff] }
  0xc3   :  { %482 = vmatprep.subr.mxu0 %v320_v21  ;;  %v1873_v21 = vld [vmem:[#allocation14 + $0x38] sm:$0xff] }
  0xc4   :  { %483 = vmatpush2.msra.mxu0 %v319_v22  ;;  %v1877_v22 = vld [vmem:[#allocation14 + $0x30] sm:$0xff] }
  0xc5   :  { %484 = vmatprep.subr.mxu0 %v318_v23 }
  0xc6   :  { %485 = vmatpush2.msra.mxu0 %v317_v24 }
  0xc7   :  { %486 = vmatprep.subr.mxu0 %v316_v25 }
  0xc8   :  { %487 = vmatpush2.msra.mxu0 %v315_v26 }
  0xc9   :  { %1217 = vmatprep.subr.mxu0 %v1641_v0 }
 0x149   :  { %v278_v34 = vpop.f32.mrf.mxu0 }
 0x14a   :  { %v279_v37 = vadd.f32 %v278_v34, %v201_v33  ;;  %v507_v33 = vrot.slane %v347_v27, %v1828_v29  ;;  %v1909_v29 = vld [vmem:[#allocation14 + $0x28] sm:$0xff] }
 0x14b   :  { %v280_v35 = vpop.f32.mrf.mxu0 }
 0x14c   :  { %v281_v36 = vadd.f32 %v280_v35, %v205_v32 }
 0x14e   :  { %413 = vmatprep.mubr.f32.mxu1 %v281_v36 }
 0x14f   :  { %414 = vmatmul.mubr.f32.vlgmr.msra.gmra.mxu1 %v279_v37 }
 0x150   :  { %1098 = vmatpush3.msra.mxu1 %v542_v39 }
 0x151   :  { %1099 = vmatprep.subr.mxu1 %v557_v40 }
 0x152   :  { %1100 = vmatpush3.msra.mxu1 %v541_v41 }
 0x153   :  { %1101 = vmatprep.subr.mxu1 %v556_v48  ;;  %v1938_v48 = vld [vmem:[#allocation14] sm:$0xff] }
 0x154   :  { %1102 = vmatpush3.msra.mxu1 %v540_v49 }
 0x155   :  { %1103 = vmatprep.subr.mxu1 %v555_v50  ;;  %v1091_v50 = vld [vmem:[%s2072_s7] ss:$0 sm:$0xff] }
 0x156   :  { %1104 = vmatpush3.msra.mxu1 %v539_v51 }
 0x157   :  { %1105 = vmatprep.subr.mxu1 %v554_v52 }
 0x158   :  { %1106 = vmatpush3.msra.mxu1 %v538_v53  ;;  %v636_v53 = vld [vmem:[%s2073_s8] sm:$0xf] }
 0x159   :  { %1107 = vmatprep.subr.mxu1 %v553_v54 }
 0x15a   :  { %1108 = vmatpush3.msra.mxu1 %v537_v55  ;;  %v638_v55 = vld [vmem:[%s2074_s9] sm:$0xf] }
 0x15b   :  { %1109 = vmatprep.subr.mxu1 %v552_v56 }
 0x15c   :  { %1110 = vmatpush3.msra.mxu1 %v536_v57 }
 0x15d   :  { %1111 = vmatprep.subr.mxu1 %v551_v58  ;;  %v832_v58 = vld [vmem:[#allocation16 + $0x78] sm:$0xff] }
 0x15e   :  { %1112 = vmatpush3.msra.mxu1 %v535_v59  ;;  %v831_v59 = vld [vmem:[#allocation16 + $0x70] sm:$0xff] }
 0x15f   :  { %1113 = vmatprep.subr.mxu1 %v550_v60  ;;  %v830_v60 = vld [vmem:[#allocation16 + $0x68] sm:$0xff] }
 0x160   :  { %1114 = vmatpush3.msra.mxu1 %v534_v61 }
 0x161   :  { %1115 = vmatprep.subr.mxu1 %v549_v62 }
 0x162   :  { %1116 = vmatpush3.msra.mxu1 %v533_v63 }
 0x163   :  { %1117 = vmatprep.subr.mxu1 %v548_v1 }
 0x164   :  { %1118 = vmatpush3.msra.mxu1 %v532_v2  ;;  %v829_v2 = vld [vmem:[#allocation16 + $0x60] sm:$0xff] }
 0x165   :  { %1119 = vmatprep.subr.mxu1 %v547_v3  ;;  %v828_v3 = vld [vmem:[#allocation16 + $0x58] sm:$0xff] }
 0x166   :  { %1120 = vmatpush3.msra.mxu1 %v531_v4  ;;  %v827_v4 = vld [vmem:[#allocation16 + $0x50] sm:$0xff] }
 0x167   :  { %1121 = vmatprep.subr.mxu1 %v546_v5  ;;  %v826_v5 = vld [vmem:[#allocation16 + $0x48] sm:$0xff] }
 0x168   :  { %1122 = vmatpush3.msra.mxu1 %v530_v6  ;;  %v825_v6 = vld [vmem:[#allocation16 + $0x40] sm:$0xff] }
 0x169   :  { %1123 = vmatprep.subr.mxu1 %v545_v7  ;;  %v824_v7 = vld [vmem:[#allocation16 + $0x38] sm:$0xff] }
 0x16a   :  { %1124 = vmatpush3.msra.mxu1 %v529_v8  ;;  %v823_v8 = vld [vmem:[#allocation16 + $0x30] sm:$0xff] }
 0x16b   :  { %1125 = vmatprep.subr.mxu1 %v544_v9  ;;  %v822_v9 = vld [vmem:[#allocation16 + $0x28] sm:$0xff] }
 0x16c   :  { %1126 = vmatpush3.msra.mxu1 %v528_v10  ;;  %v821_v10 = vld [vmem:[#allocation16 + $0x20] sm:$0xff] }
 0x16d   :  { %1127 = vmatprep.subr.mxu1 %v543_v11  ;;  %v820_v11 = vld [vmem:[#allocation16 + $0x18] sm:$0xff] }
 0x16e   :  { %1128 = vmatpush3.msra.mxu1 %v527_v12  ;;  %v819_v12 = vld [vmem:[#allocation16 + $0x10] sm:$0xff] }
 0x16f   :  { %1252 = vmatprep.subr.mxu1 %v1641_v0 }
 0x20f   :  { %v415_v42 = vpop.f32.mrf.mxu1 }
 0x210   :  { %v1834_v43 = vsub.f32 %v279_v37, %v415_v42 }
 0x211   :  { %v417_v44 = vpop.f32.mrf.mxu1 }
 0x212   :  { %v1836_v45 = vsub.f32 %v281_v36, %v417_v44  ;;  %v422_v47 = vmul.f32 %v1834_v43, %v1834_v43  ;;  %v516_v36 = vrot.slane %v348_v28, %v1830_v30  ;;  %v1914_v30 = vld [vmem:[#allocation14 + $0x20] sm:$0xff] }
 0x214   :  { %v423_v46 = vmul.f32 %v1836_v45, %v1836_v45 }
 0x216   :  { %488 = vmatprep.mubr.f32.mxu0 %v423_v46 }
 0x217   :  { %489 = vmatmul.mubr.f32.vlgmr.msra.gmra.mxu0 %v422_v47  ;;  %v1932_v47 = vld [vmem:[#allocation14 + $0x8] sm:$0xff] }
 0x218   :  { %1218 = vmatpush3.msra.mxu0 %v1842_v13  ;;  %1249 = vmatprep.mubr.msk.f32.mxu0 %vm1642_vm1, %v1641_v0 }
 0x219   :  { %1219 = vmatprep.subr.mxu0 %v1641_v0 }
 0x21a   :  { %1220 = vmatpush3.msra.mxu0 %v1844_v14 }
 0x21b   :  { %1221 = vmatprep.subr.mxu0 %v1641_v0 }
 0x21c   :  { %1222 = vmatpush3.msra.mxu0 %v1849_v15 }
 0x21d   :  { %1223 = vmatprep.subr.mxu0 %v1641_v0 }
 0x21e   :  { %1224 = vmatpush3.msra.mxu0 %v1853_v16 }
 0x21f   :  { %1225 = vmatprep.subr.mxu0 %v1641_v0 }
 0x220   :  { %1226 = vmatpush3.msra.mxu0 %v1857_v17 }
 0x221   :  { %1227 = vmatprep.subr.mxu0 %v1641_v0 }
 0x222   :  { %1228 = vmatpush3.msra.mxu0 %v1861_v18 }
 0x223   :  { %1229 = vmatprep.subr.mxu0 %v1641_v0 }
 0x224   :  { %1230 = vmatpush3.msra.mxu0 %v1865_v19 }
 0x225   :  { %1231 = vmatprep.subr.mxu0 %v1641_v0 }
 0x226   :  { %1232 = vmatpush3.msra.mxu0 %v1869_v20 }
 0x227   :  { %1233 = vmatprep.subr.mxu0 %v1641_v0 }
 0x228   :  { %1234 = vmatpush3.msra.mxu0 %v1873_v21 }
 0x229   :  { %1235 = vmatprep.subr.mxu0 %v1641_v0 }
 0x22a   :  { %1236 = vmatpush3.msra.mxu0 %v1877_v22 }
 0x22b   :  { %1237 = vmatprep.subr.mxu0 %v1641_v0 }
 0x22c   :  { %1238 = vmatpush3.msra.mxu0 %v1909_v29 }
 0x22d   :  { %1239 = vmatprep.subr.mxu0 %v1641_v0 }
 0x22e   :  { %1240 = vmatpush3.msra.mxu0 %v1914_v30 }
 0x22f   :  { %1241 = vmatprep.subr.mxu0 %v1641_v0 }
 0x2d7   :  { %v490_v23 = vpop.f32.mrf.mxu0 }
 0x2d8   :  { %v491_v24 = vadd.f32 1e-05, %v490_v23  ;;  %v818_v23 = vld [vmem:[#allocation16 + $0x8] sm:$0xff] }
 0x2d9   :  { %v492_v25 = vpop.f32.mrf.mxu0 }
 0x2da   :  { %1408 = vrsqrt.f32 %v491_v24  ;;  %v493_v26 = vadd.f32 1e-05, %v492_v25  ;;  %v817_v24 = vld [vmem:[#allocation16] sm:$0xff] }
 0x2dc   :  { %1410 = vrsqrt.f32 %v493_v26 }
 0x2e7   :  { %v1409_v32 = vpop.eup %1408 }
 0x2e8   :  { %v497_v34 = vmul.f32 %v1409_v32, %v1834_v43  ;;  %v1920_v43 = vld [vmem:[#allocation14 + $0x18] sm:$0xff] }
 0x2e9   :  { %v1411_v35 = vpop.eup %1410  ;;  %1242 = vmatpush3.msra.mxu0 %v1920_v43 }
 0x2ea   :  { %v498_v37 = vmul.f32 %v1411_v35, %v1836_v45  ;;  %v510_v39 = vmul.f32 %v503_v31, %v497_v34  ;;  %1243 = vmatprep.subr.mxu0 %v1641_v0  ;;  %v1926_v45 = vld [vmem:[#allocation14 + $0x10] sm:$0xff] }
 0x2eb   :  { %1244 = vmatpush3.msra.mxu0 %v1926_v45  ;;  %v1092_v31 = vld [vmem:[%s2075_s10] ss:$0 sm:$0xff] }
 0x2ec   :  { %v511_v40 = vmul.f32 %v507_v33, %v498_v37  ;;  %v523_v41 = vadd.f32 %v516_v36, %v510_v39  ;;  %1245 = vmatprep.subr.mxu0 %v1641_v0  ;;  %v1093_v33 = vld [vmem:[%s2076_s11] ss:$0 sm:$0xff] }
 0x2ed   :  { %1246 = vmatpush3.msra.mxu0 %v1932_v47 }
 0x2ee   :  { %v524_v42 = vadd.f32 %v520_v38, %v511_v40  ;;  %v525_v46 = vmax.f32 %v523_v41, 0.0  ;;  %1247 = vmatprep.subr.mxu0 %v1641_v0  ;;  %v1095_v38 = vld [vmem:[%s2080_s15] ss:$0 sm:$0xff] }
 0x2ef   :  { %1248 = vmatpush3.msra.mxu0 %v1938_v48  ;;  %v1096_v40 = vld [vmem:[%s2081_s16] ss:$0 sm:$0xff] }
 0x2f0   :  { %v526_v44 = vmax.f32 %v524_v42, 0.0  ;;  %1287 = vmatprep.subr.mxu0 %v1641_v0 }
 0x2f2   :  { %630 = vmatprep.mubr.f32.mxu1 %v526_v44 }
 0x2f3   :  { %631 = vmatmul.mubr.f32.vlgmr.msra.gmra.mxu1 %v525_v46 }
 0x2f4   :  { %1253 = vmatpush3.msra.mxu1 %v1842_v13  ;;  %1284 = vmatprep.mubr.msk.f32.mxu1 %vm1642_vm1, %v1641_v0 }
 0x2f5   :  { %1254 = vmatprep.subr.mxu1 %v1641_v0 }
 0x2f6   :  { %1255 = vmatpush3.msra.mxu1 %v1844_v14 }
 0x2f7   :  { %1256 = vmatprep.subr.mxu1 %v1641_v0 }
 0x2f8   :  { %1257 = vmatpush3.msra.mxu1 %v1849_v15 }
 0x2f9   :  { %1258 = vmatprep.subr.mxu1 %v1641_v0 }
 0x2fa   :  { %1259 = vmatpush3.msra.mxu1 %v1853_v16 }
 0x2fb   :  { %1260 = vmatprep.subr.mxu1 %v1641_v0 }
 0x2fc   :  { %1261 = vmatpush3.msra.mxu1 %v1857_v17 }
 0x2fd   :  { %1262 = vmatprep.subr.mxu1 %v1641_v0 }
 0x2fe   :  { %1263 = vmatpush3.msra.mxu1 %v1861_v18 }
 0x2ff   :  { %1264 = vmatprep.subr.mxu1 %v1641_v0 }
 0x300   :  { %1265 = vmatpush3.msra.mxu1 %v1865_v19 }
 0x301   :  { %1266 = vmatprep.subr.mxu1 %v1641_v0 }
 0x302   :  { %1267 = vmatpush3.msra.mxu1 %v1869_v20 }
 0x303   :  { %1268 = vmatprep.subr.mxu1 %v1641_v0 }
 0x304   :  { %1269 = vmatpush3.msra.mxu1 %v1873_v21 }
 0x305   :  { %1270 = vmatprep.subr.mxu1 %v1641_v0 }
 0x306   :  { %1271 = vmatpush3.msra.mxu1 %v1877_v22 }
 0x307   :  { %1272 = vmatprep.subr.mxu1 %v1641_v0 }
 0x308   :  { %1273 = vmatpush3.msra.mxu1 %v1909_v29 }
 0x309   :  { %1274 = vmatprep.subr.mxu1 %v1641_v0 }
 0x30a   :  { %1275 = vmatpush3.msra.mxu1 %v1914_v30 }
 0x30b   :  { %1276 = vmatprep.subr.mxu1 %v1641_v0 }
 0x30c   :  { %1277 = vmatpush3.msra.mxu1 %v1920_v43 }
 0x30d   :  { %1278 = vmatprep.subr.mxu1 %v1641_v0 }
 0x30e   :  { %1279 = vmatpush3.msra.mxu1 %v1926_v45 }
 0x30f   :  { %1280 = vmatprep.subr.mxu1 %v1641_v0 }
 0x310   :  { %1281 = vmatpush3.msra.mxu1 %v1932_v47 }
 0x311   :  { %1282 = vmatprep.subr.mxu1 %v1641_v0 }
 0x312   :  { %1283 = vmatpush3.msra.mxu1 %v1938_v48 }
 0x313   :  { %1322 = vmatprep.subr.mxu1 %v1641_v0 }
 0x3b3   :  { %v1129_v49 = vpop.f32.mrf.mxu1 }
 0x3b5   :  { %v1130_v51 = vpop.f32.mrf.mxu1 }
 0x3b6   :  { %v1131_v52 = vadd.f32 %v1130_v51, %v1129_v49 }
 0x3b8   :  { %v633_v54 = vadd.f32 %v1131_v52, %v1091_v50 }
 0x3ba   :  { %v637_v56 = vadd.f32 %v636_v53, %v633_v54 }
 0x3bc   :  { %v639_v57 = vadd.f32 %v638_v55, %v637_v56 }
 0x3be   :  { %1250 = vmatmul.mubr.f32.vlgmr.msra.gmra.mxu0 %v639_v57 }
 0x3bf   :  { %1319 = vmatprep.mubr.msk.f32.mxu0 %vm1642_vm1, %v1641_v0  ;;  %1288 = vmatpush3.msra.mxu0 %v832_v58 }
 0x3c0   :  { %1289 = vmatprep.subr.mxu0 %v1641_v0 }
 0x3c1   :  { %1290 = vmatpush3.msra.mxu0 %v831_v59 }
 0x3c2   :  { %1291 = vmatprep.subr.mxu0 %v1641_v0 }
 0x3c3   :  { %1292 = vmatpush3.msra.mxu0 %v830_v60 }
 0x3c4   :  { %1293 = vmatprep.subr.mxu0 %v1641_v0 }
 0x3c5   :  { %1294 = vmatpush3.msra.mxu0 %v829_v2 }
 0x3c6   :  { %1295 = vmatprep.subr.mxu0 %v1641_v0 }
 0x3c7   :  { %1296 = vmatpush3.msra.mxu0 %v828_v3 }
 0x3c8   :  { %1297 = vmatprep.subr.mxu0 %v1641_v0 }
 0x3c9   :  { %1298 = vmatpush3.msra.mxu0 %v827_v4 }
 0x3ca   :  { %1299 = vmatprep.subr.mxu0 %v1641_v0 }
 0x3cb   :  { %1300 = vmatpush3.msra.mxu0 %v826_v5 }
 0x3cc   :  { %1301 = vmatprep.subr.mxu0 %v1641_v0 }
 0x3cd   :  { %1302 = vmatpush3.msra.mxu0 %v825_v6 }
 0x3ce   :  { %1303 = vmatprep.subr.mxu0 %v1641_v0 }
 0x3cf   :  { %1304 = vmatpush3.msra.mxu0 %v824_v7 }
 0x3d0   :  { %1305 = vmatprep.subr.mxu0 %v1641_v0 }
 0x3d1   :  { %1306 = vmatpush3.msra.mxu0 %v823_v8 }
 0x3d2   :  { %1307 = vmatprep.subr.mxu0 %v1641_v0 }
 0x3d3   :  { %1308 = vmatpush3.msra.mxu0 %v822_v9 }
 0x3d4   :  { %1309 = vmatprep.subr.mxu0 %v1641_v0 }
 0x3d5   :  { %1310 = vmatpush3.msra.mxu0 %v821_v10 }
 0x3d6   :  { %1311 = vmatprep.subr.mxu0 %v1641_v0 }
 0x3d7   :  { %1312 = vmatpush3.msra.mxu0 %v820_v11 }
 0x3d8   :  { %1313 = vmatprep.subr.mxu0 %v1641_v0 }
 0x3d9   :  { %1314 = vmatpush3.msra.mxu0 %v819_v12 }
 0x3da   :  { %1315 = vmatprep.subr.mxu0 %v1641_v0 }
 0x3db   :  { %1316 = vmatpush3.msra.mxu0 %v818_v23 }
 0x3dc   :  { %1317 = vmatprep.subr.mxu0 %v1641_v0 }
 0x3dd   :  { %1318 = vmatpush3.msra.mxu0 %v817_v24 }
 0x3de   :  { %1357 = vmatprep.subr.mxu0 %v1641_v0 }
 0x47e   :  { %v724_v61 = vpop.f32.mrf.mxu0 }
 0x47f   :  { %v1963_v62 = vsub.f32 %v639_v57, %v724_v61 }
 0x480   :  { %v1251_v63 = vpop.f32.mrf.mxu0 }
 0x481   :  { %v729_v1 = vmul.f32 %v1963_v62, %v1963_v62 }
 0x483   :  { %1285 = vmatmul.mubr.f32.vlgmr.msra.gmra.mxu1 %v729_v1 }
 0x484   :  { %1323 = vmatpush3.msra.mxu1 %v1842_v13  ;;  %1354 = vmatprep.mubr.msk.f32.mxu1 %vm1642_vm1, %v1641_v0 }
 0x485   :  { %1324 = vmatprep.subr.mxu1 %v1641_v0 }
 0x486   :  { %1325 = vmatpush3.msra.mxu1 %v1844_v14 }
 0x487   :  { %1326 = vmatprep.subr.mxu1 %v1641_v0 }
 0x488   :  { %1327 = vmatpush3.msra.mxu1 %v1849_v15 }
 0x489   :  { %1328 = vmatprep.subr.mxu1 %v1641_v0 }
 0x48a   :  { %1329 = vmatpush3.msra.mxu1 %v1853_v16 }
 0x48b   :  { %1330 = vmatprep.subr.mxu1 %v1641_v0 }
 0x48c   :  { %1331 = vmatpush3.msra.mxu1 %v1857_v17 }
 0x48d   :  { %1332 = vmatprep.subr.mxu1 %v1641_v0 }
 0x48e   :  { %1333 = vmatpush3.msra.mxu1 %v1861_v18 }
 0x48f   :  { %1334 = vmatprep.subr.mxu1 %v1641_v0 }
 0x490   :  { %1335 = vmatpush3.msra.mxu1 %v1865_v19 }
 0x491   :  { %1336 = vmatprep.subr.mxu1 %v1641_v0 }
 0x492   :  { %1337 = vmatpush3.msra.mxu1 %v1869_v20 }
 0x493   :  { %1338 = vmatprep.subr.mxu1 %v1641_v0 }
 0x494   :  { %1339 = vmatpush3.msra.mxu1 %v1873_v21 }
 0x495   :  { %1340 = vmatprep.subr.mxu1 %v1641_v0 }
 0x496   :  { %1341 = vmatpush3.msra.mxu1 %v1877_v22 }
 0x497   :  { %1342 = vmatprep.subr.mxu1 %v1641_v0 }
 0x498   :  { %1343 = vmatpush3.msra.mxu1 %v1909_v29 }
 0x499   :  { %1344 = vmatprep.subr.mxu1 %v1641_v0 }
 0x49a   :  { %1345 = vmatpush3.msra.mxu1 %v1914_v30 }
 0x49b   :  { %1346 = vmatprep.subr.mxu1 %v1641_v0 }
 0x49c   :  { %1347 = vmatpush3.msra.mxu1 %v1920_v43 }
 0x49d   :  { %1348 = vmatprep.subr.mxu1 %v1641_v0 }
 0x49e   :  { %1349 = vmatpush3.msra.mxu1 %v1926_v45 }
 0x49f   :  { %1350 = vmatprep.subr.mxu1 %v1641_v0 }
 0x4a0   :  { %1351 = vmatpush3.msra.mxu1 %v1932_v47 }
 0x4a1   :  { %1352 = vmatprep.subr.mxu1 %v1641_v0 }
 0x4a2   :  { %1353 = vmatpush3.msra.mxu1 %v1938_v48 }
 0x543   :  { %v796_v25 = vpop.f32.mrf.mxu1 }
 0x544   :  { %v797_v26 = vadd.f32 1e-05, %v796_v25 }
 0x545   :  { %v1286_v27 = vpop.f32.mrf.mxu1 }
 0x546   :  { %1412 = vrsqrt.f32 %v797_v26 }
 0x553   :  { %v1413_v28 = vpop.eup %1412 }
 0x554   :  { %v801_v32 = vmul.f32 %v1413_v28, %v1963_v62 }
 0x556   :  { %v808_v34 = vmul.f32 %v1092_v31, %v801_v32 }
 0x558   :  { %v815_v35 = vadd.f32 %v1093_v33, %v808_v34 }
 0x55a   :  { %v816_v36 = vmax.f32 %v815_v35, 0.0 }
 0x55c   :  { %1320 = vmatmul.mubr.f32.vlgmr.msra.gmra.mxu0 %v816_v36 }
 0x55d   :  { %1358 = vmatpush3.msra.mxu0 %v1842_v13  ;;  %1389 = vmatprep.mubr.msk.f32.mxu0 %vm1642_vm1, %v1641_v0  ;;  %v1094_v13 = vld [vmem:[%s2079_s14] ss:$0 sm:$0xff] }
 0x55e   :  { %1359 = vmatprep.subr.mxu0 %v1641_v0 }
 0x55f   :  { %1360 = vmatpush3.msra.mxu0 %v1844_v14 }
 0x560   :  { %1361 = vmatprep.subr.mxu0 %v1641_v0 }
 0x561   :  { %1362 = vmatpush3.msra.mxu0 %v1849_v15 }
 0x562   :  { %1363 = vmatprep.subr.mxu0 %v1641_v0 }
 0x563   :  { %1364 = vmatpush3.msra.mxu0 %v1853_v16 }
 0x564   :  { %1365 = vmatprep.subr.mxu0 %v1641_v0 }
 0x565   :  { %1366 = vmatpush3.msra.mxu0 %v1857_v17 }
 0x566   :  { %1367 = vmatprep.subr.mxu0 %v1641_v0 }
 0x567   :  { %1368 = vmatpush3.msra.mxu0 %v1861_v18 }
 0x568   :  { %1369 = vmatprep.subr.mxu0 %v1641_v0 }
 0x569   :  { %1370 = vmatpush3.msra.mxu0 %v1865_v19 }
 0x56a   :  { %1371 = vmatprep.subr.mxu0 %v1641_v0 }
 0x56b   :  { %1372 = vmatpush3.msra.mxu0 %v1869_v20 }
 0x56c   :  { %1373 = vmatprep.subr.mxu0 %v1641_v0 }
 0x56d   :  { %1374 = vmatpush3.msra.mxu0 %v1873_v21 }
 0x56e   :  { %1375 = vmatprep.subr.mxu0 %v1641_v0 }
 0x56f   :  { %1376 = vmatpush3.msra.mxu0 %v1877_v22 }
 0x570   :  { %1377 = vmatprep.subr.mxu0 %v1641_v0 }
 0x571   :  { %1378 = vmatpush3.msra.mxu0 %v1909_v29 }
 0x572   :  { %1379 = vmatprep.subr.mxu0 %v1641_v0 }
 0x573   :  { %1380 = vmatpush3.msra.mxu0 %v1914_v30 }
 0x574   :  { %1381 = vmatprep.subr.mxu0 %v1641_v0 }
 0x575   :  { %1382 = vmatpush3.msra.mxu0 %v1920_v43 }
 0x576   :  { %1383 = vmatprep.subr.mxu0 %v1641_v0 }
 0x577   :  { %1384 = vmatpush3.msra.mxu0 %v1926_v45 }
 0x578   :  { %1385 = vmatprep.subr.mxu0 %v1641_v0 }
 0x579   :  { %1386 = vmatpush3.msra.mxu0 %v1932_v47 }
 0x57a   :  { %1387 = vmatprep.subr.mxu0 %v1641_v0 }
 0x57b   :  { %1388 = vmatpush3.msra.mxu0 %v1938_v48 }
 0x61c   :  { %v906_v14 = vpop.f32.mrf.mxu0 }
 0x61d   :  { %v907_v15 = vadd.f32 %v1094_v13, %v906_v14 }
 0x61e   :  { %v1321_v16 = vpop.f32.mrf.mxu0 }
 0x61f   :  { %1355 = vmatmul.mubr.f32.vlgmr.msra.gmra.mxu1 %v907_v15 }
 0x6df   :  { %v978_v17 = vpop.f32.mrf.mxu1 }
 0x6e0   :  { %v982_v18 = vsub.f32 %v907_v15, %v978_v17 }
 0x6e1   :  { %v1356_v19 = vpop.f32.mrf.mxu1 }
 0x6e2   :  { %v983_v20 = vmul.f32 %v982_v18, %v982_v18 }
 0x6e4   :  { %1390 = vmatmul.mubr.f32.vlgmr.msra.gmra.mxu0 %v983_v20 }
 0x7a4   :  { %v1050_v21 = vpop.f32.mrf.mxu0 }
 0x7a5   :  { %v1051_v22 = vadd.f32 1e-05, %v1050_v21 }
 0x7a6   :  { %v1391_v37 = vpop.f32.mrf.mxu0 }
 0x7a7   :  { %1414 = vrsqrt.f32 %v1051_v22 }
 0x7b4   :  { %v1415_v0 = vpop.eup %1414 }
 0x7b5   :  { %v1055_v39 = vmul.f32 %v1415_v0, %v982_v18 }
 0x7b7   :  { %v1062_v41 = vmul.f32 %v1095_v38, %v1055_v39 }
 0x7b9   :  { %v1069_v42 = vadd.f32 %v1096_v40, %v1062_v41 }
 0x7bb   :  { %1070 = vst [vmem:[#allocation17] sm:$0xf] %v1069_v42 }
 0x7bc   :  { %1607 = shalt.err (!%p1604_p7)
}
 0x7bd   :  { %1080 = dma.vmem_to_hbm [thread:$0]  %s1078_s1, 64, %s2082_s17, [#allocation4]  }
 0x7be   :  { %1626 = dma.done.wait [#allocation4], 64  }
 0x7bf   :  { %1627 = vsyncadd [#allocation4], 4294967232 }
 0x7c0   :  { %1084 = vsyncpa [#allocation3], 1 }
 0x7c1   :  { %1085 = vsyncpa [#allocation6], 1 }
 0x7c2   :  { %1086 = vsyncpa [#allocation9], 1 }
 0x7c3   :  { %1087 = vsyncpa [#allocation12], 1 }
 0x7c4   :  { %1088 = vsyncpa [#allocation15], 1 }
 0x7c5   :  { %1089 = vsyncpa [#allocation4], 1 }

</bundles_post_ra>
